<compile_context>
chip_gen: v6e
topology: v6e:2x2x1
jax: 0.10.0
libtpu: 0.0.40
codegen_flags: <defaults>
</compile_context>

<pallas_src>
import numpy as np
import jax
import jax.numpy as jnp
from jax import lax
from jax.experimental import pallas as pl
from jax.experimental.pallas import tpu as pltpu


# --------------------------- host-side builders -------------------------------

def _bilinear_matrix(out_size, in_size):
    """U so that (U @ x) == F.interpolate(..., mode='bilinear', align_corners=False)
    along one axis (half-pixel centers, edge clamp).  Taps are exact in bf16."""
    U = np.zeros((out_size, in_size), np.float32)
    for o in range(out_size):
        s = max((o + 0.5) * (in_size / out_size) - 0.5, 0.0)
        i0 = min(int(np.floor(s)), in_size - 1)
        i1 = min(i0 + 1, in_size - 1)
        l1 = np.float32(s - i0)
        U[o, i0] += np.float32(1.0) - l1
        U[o, i1] += l1
    return U


def _toeplitz_blocks(w_hwio, out_w):
    """(3,3,Cin,Cout) -> (3, out_w*Cin, out_w*Cout): per-kh block-Toeplitz matrices
    so a 'same' 3x3 conv over a merged-lane (rows, out_w*Cin) image becomes a
    single matmul.  Row order within a kh block: (w_in, cin); columns:
    (w_out, cout).  W zero-padding is implicit (out-of-range taps get weight 0)."""
    Cin, Cout = int(w_hwio.shape[2]), int(w_hwio.shape[3])
    w_in = np.arange(out_w)[:, None]
    w_out = np.arange(out_w)[None, :]
    kw = w_in - w_out + 1
    valid = ((kw >= 0) & (kw <= 2)).astype(np.float32)
    kw = np.clip(kw, 0, 2)
    big = w_hwio[:, kw, :, :]                               # (3, w_in, w_out, Cin, Cout)
    big = big * jnp.asarray(valid)[None, :, :, None, None]
    big = jnp.transpose(big, (0, 1, 3, 2, 4))               # (3, w_in, Cin, w_out, Cout)
    return big.reshape(3, out_w * Cin, out_w * Cout)


def bn_fold(gamma, beta, mean, var, eps=1e-5):
    scale = gamma / jnp.sqrt(var + eps)
    shift = beta - mean * scale
    return scale, shift


# --------------------------- public forward ----------------------------------

def psp_upsample_forward(x_nchw, up_nchw, P):
    """Fused Pallas forward.  PyTorch NCHW at the boundary; inside: batch folded
    into rows, merged-lane (rows = N*2H, lanes = W*C channel-minor) layout."""
    N, Cx, H, W = x_nchw.shape
    Cup = up_nchw.shape[1]
    Co = P["wa"].shape[-1]
    H2, W2 = 2 * H, 2 * W
    Lxi = W * Cx                       # merged lane width of x before upsampling
    Lx, Lu, Lo = W2 * Cx, W2 * Cup, W2 * Co
    L1 = Lx + Lu                       # merged lane width of concat([xu, up])
    rup = lambda v: -(-v // 128) * 128
    L1p, Lop = rup(L1), rup(Lo)
    Wtab = max(L1p, Lop)
    M = N * H2                         # batch folded into rows
    RH = H2 + 2                        # per-batch rows in the halo'd scratch
    bf16, f32 = jnp.bfloat16, jnp.float32

    # ---- data: NCHW -> batch-stacked merged-lane 2-D ----
    x2d = jnp.transpose(x_nchw, (0, 2, 3, 1)).reshape(N * H, Lxi).astype(bf16)
    up2d = jnp.transpose(up_nchw, (0, 2, 3, 1)).reshape(M, Lu).astype(f32)

    # ---- exact bilinear-x2 operators (data independent, bf16-exact taps) ----
    UHB = jnp.asarray(np.kron(np.eye(N, dtype=np.float32),
                              _bilinear_matrix(H2, H))).astype(bf16)      # (N*2H, N*H)
    MW = jnp.asarray(np.kron(_bilinear_matrix(W2, W).T,
                             np.eye(Cx, dtype=np.float32))).astype(bf16)  # (W*Cx, 2W*Cx)

    # ---- weights: block-Toeplitz, each kh block padded to a 128 multiple ----
    def pad_blocks(blk, lane_pad):
        k = blk.shape[1]
        blk = jnp.pad(blk, ((0, 0), (0, lane_pad - k), (0, 0)))
        return blk.reshape(3 * lane_pad, -1)

    # first conv: K rows ordered [xu rows | up rows] per kh, matching the merged scratch
    blk1 = jnp.concatenate([_toeplitz_blocks(P["wa"][:, :, :Cx, :], W2),
                            _toeplitz_blocks(P["wa"][:, :, Cx:, :], W2)], axis=1)
    w1_big = pad_blocks(blk1, L1p).astype(bf16)                            # (3*L1p, Lo)
    # conv_b with the 1x1 shortcut stacked under it along K
    wsc_big = jnp.kron(jnp.eye(W2, dtype=f32), P["wsc"])                   # (Lx, Lo)
    wbsc_big = jnp.concatenate(
        [pad_blocks(_toeplitz_blocks(P["wb"], W2), Lop), wsc_big], axis=0).astype(bf16)
    wc_big = pad_blocks(_toeplitz_blocks(P["wc"], W2), Lop).astype(bf16)
    wd_big = pad_blocks(_toeplitz_blocks(P["wd"], W2), Lop).astype(bf16)

    # ---- per-channel affines / biases packed into one (10, Wtab) f32 table ----
    s1, b1 = P["bn1"]; s2, b2 = P["bn2"]; s3, b3 = P["bn3"]; s4, b4 = P["bn4"]

    def row(v):
        v = v.reshape(-1).astype(f32)
        return jnp.pad(v, (0, Wtab - v.shape[0]))

    vec = jnp.stack([
        row(jnp.concatenate([jnp.tile(s1[:Cx], W2), jnp.tile(s1[Cx:], W2)])),  # 0: BN1 scale
        row(jnp.concatenate([jnp.tile(b1[:Cx], W2), jnp.tile(b1[Cx:], W2)])),  # 1: BN1 shift
        row(jnp.tile(s2, W2)),                                                 # 2: BN2 scale
        row(jnp.tile(b2 + P["ba"] * s2, W2)),                                  # 3: BN2 shift (+conv_a bias)
        row(jnp.tile(P["bb"] + P["bsc"], W2)),                                 # 4: conv_b + shortcut bias
        row(jnp.tile(s3, W2)),                                                 # 5: BN3 scale
        row(jnp.tile(b3, W2)),                                                 # 6: BN3 shift
        row(jnp.tile(s4, W2)),                                                 # 7: BN4 scale
        row(jnp.tile(b4 + P["bc"] * s4, W2)),                                  # 8: BN4 shift (+conv_c bias)
        row(jnp.tile(P["bd"], W2)),                                            # 9: conv_d bias
    ])

    # ------------------------------ fused kernel ------------------------------
    def kernel(x_ref, up_ref, uhb_ref, mw_ref, vec_ref,
               w1_ref, wbsc_ref, wc_ref, wd_ref,
               o_ref, pad1_ref, pado_ref):
        # Zero the halo'd scratches once: border rows / pad lanes stay zero
        # (this IS the conv zero padding); interiors are overwritten before use.
        pad1_ref[...] = jnp.zeros_like(pad1_ref)
        pado_ref[...] = jnp.zeros_like(pado_ref)
        vecs = vec_ref[...]

        def vrow(i, L):
            return vecs[i:i + 1, 0:L]            # (1, L) broadcast row

        def put(ref, val, L):
            # Write a (N*2H, L) activation into each batch's halo'd interior (bf16).
            v = val.astype(bf16)
            for n in range(N):
                ref[n * RH + 1:n * RH + 1 + H2, 0:L] = v[n * H2:(n + 1) * H2, :]

        def row_slabs(ref):
            # (N*2H, 3*Lpad) conv lhs: per batch, lane-concat the kh = 0/1/2
            # row-shifted slabs (128-aligned offsets), then stack batches along rows.
            slabs = []
            for n in range(N):
                b = n * RH
                slabs.append(jnp.concatenate(
                    [ref[b + 0:b + 0 + H2, :],
                     ref[b + 1:b + 1 + H2, :],
                     ref[b + 2:b + 2 + H2, :]], axis=1))
            return jnp.concatenate(slabs, axis=0) if N > 1 else slabs[0]

        def mm(a, w_ref):
            return jnp.dot(a, w_ref[...], preferred_element_type=f32)

        # ---- bilinear x2 upsample of x: two bf16 MXU dots (block-diag over batch) ----
        xh = jnp.dot(uhb_ref[...], x_ref[...], preferred_element_type=f32)      # (M, W*Cx)
        xu = jnp.dot(xh.astype(bf16), mw_ref[...], preferred_element_type=f32)  # (M, 2W*Cx)

        # ---- self.conv : BN1+ReLU on concat([xu, up]) (merged lanes) then conv_a ----
        cat = jnp.concatenate([xu, up_ref[...]], axis=1)                         # (M, L1)
        put(pad1_ref, jnp.maximum(cat * vrow(0, L1) + vrow(1, L1), 0.0), L1)
        t1 = mm(row_slabs(pad1_ref), w1_ref)             # conv_a (bias folded into BN2 shift)

        # BN2+ReLU, then conv_b with the 1x1 shortcut fused along K (bsc folded into bias).
        put(pado_ref, jnp.maximum(t1 * vrow(2, Lo) + vrow(3, Lo), 0.0), Lo)
        lhs_b = jnp.concatenate([row_slabs(pado_ref), xu.astype(bf16)], axis=1)
        p = mm(lhs_b, wbsc_ref) + vrow(4, Lo)            # conv_b + shortcut + (bb + bsc)

        # ---- self.conv2 ----
        put(pado_ref, jnp.maximum(p * vrow(5, Lo) + vrow(6, Lo), 0.0), Lo)       # BN3+ReLU
        t3 = mm(row_slabs(pado_ref), wc_ref)             # conv_c (bias folded into BN4 shift)
        put(pado_ref, jnp.maximum(t3 * vrow(7, Lo) + vrow(8, Lo), 0.0), Lo)      # BN4+ReLU
        p2 = mm(row_slabs(pado_ref), wd_ref) + vrow(9, Lo)                       # conv_d

        o_ref[...] = (p + p2).astype(o_ref.dtype)        # final residual, lane-dense store

    out2d = pl.pallas_call(
        kernel,
        out_shape=jax.ShapeDtypeStruct((M, Lo), x_nchw.dtype),
        scratch_shapes=[
            pltpu.VMEM((N * RH, L1p), bf16),   # halo'd concat([xu, up]) activation
            pltpu.VMEM((N * RH, Lop), bf16),   # halo'd activation, reused for 3 convs
        ],
    )(x2d, up2d, UHB, MW, vec, w1_big, wbsc_big, wc_big, wd_big)

    out = out2d.reshape(N, H2, W2, Co)
    return jnp.transpose(out, (0, 3, 1, 2))


# --------------------------- pure-JAX reference -------------------------------

def bilinear_upsample_x2(x):
    N, H, W, C = x.shape

    def idx_lambda(out_size, in_size):
        o = jnp.arange(out_size, dtype=jnp.float32)
        s = jnp.maximum((o + 0.5) * (in_size / out_size) - 0.5, 0.0)
        i0 = jnp.minimum(jnp.floor(s).astype(jnp.int32), in_size - 1)
        i1 = jnp.minimum(i0 + 1, in_size - 1)
        l1 = s - i0.astype(jnp.float32)
        return i0, i1, 1.0 - l1, l1

    h0, h1, lh0, lh1 = idx_lambda(2 * H, H)
    w0, w1, lw0, lw1 = idx_lambda(2 * W, W)
    xh = x[:, h0, :, :] * lh0[None, :, None, None] + x[:, h1, :, :] * lh1[None, :, None, None]
    return xh[:, :, w0, :] * lw0[None, None, :, None] + xh[:, :, w1, :] * lw1[None, None, :, None]


def ref_forward(x_nchw, up_nchw, P):
    x = jnp.transpose(x_nchw, (0, 2, 3, 1))
    up = jnp.transpose(up_nchw, (0, 2, 3, 1))
    xu = bilinear_upsample_x2(x)
    cat = jnp.concatenate([xu, up], axis=-1)

    def bnr(t, sb):
        s, b = sb
        return jnp.maximum(t * s + b, 0.0)

    def c3(t, w, b):
        y = lax.conv_general_dilated(t, w, (1, 1), "SAME",
                                     dimension_numbers=("NHWC", "HWIO", "NHWC"))
        return y + b

    a = bnr(cat, P["bn1"]); t = c3(a, P["wa"], P["ba"])
    a = bnr(t, P["bn2"])
    sc = jnp.einsum("nhwc,co->nhwo", xu, P["wsc"]) + P["bsc"]
    p = c3(a, P["wb"], P["bb"]) + sc
    a = bnr(p, P["bn3"]); t = c3(a, P["wc"], P["bc"])
    a = bnr(t, P["bn4"]); p2 = c3(a, P["wd"], P["bd"])
    return jnp.transpose(p + p2, (0, 3, 1, 2))


# --------------------------- main --------------------------------------------

if __name__ == "__main__":
    # PSPUpsample(x_channels=4, in_channels=8, out_channels=8)
    N, Cx, Hs, Ws = 2, 4, 8, 8        # x: (2, 4, 8, 8)
    Cup = 4                            # up channels = in_channels - x_channels
    Cin, Co = Cx + Cup, 8

    key = jax.random.PRNGKey(0)
    ks = iter(jax.random.split(key, 64))

    def nrm(shape, scale=0.1):
        return scale * jax.random.normal(next(ks), shape, jnp.float32)

    def bn_params(c):
        gamma = 1.0 + nrm((c,))
        beta = nrm((c,))
        mean = nrm((c,))
        var = jax.random.uniform(next(ks), (c,), jnp.float32, 0.5, 1.5)
        return bn_fold(gamma, beta, mean, var)

    def conv3_w(cout, cin):
        w_oihw = nrm((cout, cin, 3, 3))             # PyTorch OIHW param shape
        return jnp.transpose(w_oihw, (2, 3, 1, 0))  # -> HWIO

    P = {
        "bn1": bn_params(Cin),
        "wa": conv3_w(Co, Cin), "ba": nrm((Co,)),
        "bn2": bn_params(Co),
        "wb": conv3_w(Co, Co), "bb": nrm((Co,)),
        "bn3": bn_params(Co),
        "wc": conv3_w(Co, Co), "bc": nrm((Co,)),
        "bn4": bn_params(Co),
        "wd": conv3_w(Co, Co), "bd": nrm((Co,)),
        # shortcut 1x1: PyTorch (Co, Cx, 1, 1) -> (Cx, Co)
        "wsc": jnp.transpose(nrm((Co, Cx, 1, 1))[:, :, 0, 0], (1, 0)),
        "bsc": nrm((Co,)),
    }

    x = jax.random.normal(next(ks), (N, Cx, Hs, Ws), jnp.float32)
    up = jax.random.normal(next(ks), (N, Cup, 2 * Hs, 2 * Ws), jnp.float32)

    fwd = jax.jit(psp_upsample_forward)
    out = fwd(x, up, P)
    jax.block_until_ready(out)

    ref = ref_forward(x, up, P)
    # bf16 MXU operands (f32 accumulation) across the upsample + 4 stacked convs
    # -> bf16-level tolerance.
    np.testing.assert_allclose(np.asarray(out), np.asarray(ref), rtol=3e-2, atol=3e-2)
    assert out.shape == (N, Co, 2 * Hs, 2 * Ws)

    print("KERNEL_OK")
</pallas_src>

<mosaic_0001>
module attributes {stable_mosaic.version = 11 : i64} {
  func.func @kernel(%arg0: memref<16x32xbf16, #tpu.memory_space<vmem>>, %arg1: memref<32x64xf32, #tpu.memory_space<vmem>>, %arg2: memref<32x16xbf16, #tpu.memory_space<vmem>>, %arg3: memref<32x64xbf16, #tpu.memory_space<vmem>>, %arg4: memref<10x128xf32, #tpu.memory_space<vmem>>, %arg5: memref<384x128xbf16, #tpu.memory_space<vmem>>, %arg6: memref<448x128xbf16, #tpu.memory_space<vmem>>, %arg7: memref<384x128xbf16, #tpu.memory_space<vmem>>, %arg8: memref<384x128xbf16, #tpu.memory_space<vmem>>, %arg9: memref<32x128xf32, #tpu.memory_space<vmem>>, %arg10: memref<36x128xbf16, #tpu.memory_space<vmem>>, %arg11: memref<36x128xbf16, #tpu.memory_space<vmem>>) attributes {dimension_semantics = [], scalar_prefetch = 0 : i64, scratch_operands = 2 : i64, tpu.core_type = #tpu.core_type<tc>} {
    %cst = arith.constant 0.000000e+00 : bf16
    %0 = vector.broadcast %cst : bf16 to vector<36x128xbf16>
    %c0 = arith.constant 0 : index
    %c0_0 = arith.constant 0 : index
    %1 = vector.load %arg10[%c0, %c0_0] : memref<36x128xbf16, #tpu.memory_space<vmem>>, vector<36x128xbf16>
    tpu.vector_store %arg10[%c0, %c0_0], %0 {strides = array<i32>} : memref<36x128xbf16, #tpu.memory_space<vmem>>, vector<36x128xbf16>,
    %cst_1 = arith.constant 0.000000e+00 : bf16
    %2 = vector.broadcast %cst_1 : bf16 to vector<36x128xbf16>
    %c0_2 = arith.constant 0 : index
    %c0_3 = arith.constant 0 : index
    %3 = vector.load %arg11[%c0_2, %c0_3] : memref<36x128xbf16, #tpu.memory_space<vmem>>, vector<36x128xbf16>
    tpu.vector_store %arg11[%c0_2, %c0_3], %2 {strides = array<i32>} : memref<36x128xbf16, #tpu.memory_space<vmem>>, vector<36x128xbf16>,
    %c0_4 = arith.constant 0 : index
    %c0_5 = arith.constant 0 : index
    %4 = vector.load %arg4[%c0_4, %c0_5] : memref<10x128xf32, #tpu.memory_space<vmem>>, vector<10x128xf32>
    %c0_6 = arith.constant 0 : index
    %c0_7 = arith.constant 0 : index
    %5 = vector.load %arg2[%c0_6, %c0_7] : memref<32x16xbf16, #tpu.memory_space<vmem>>, vector<32x16xbf16>
    %c0_8 = arith.constant 0 : index
    %c0_9 = arith.constant 0 : index
    %6 = vector.load %arg0[%c0_8, %c0_9] : memref<16x32xbf16, #tpu.memory_space<vmem>>, vector<16x32xbf16>
    %cst_10 = arith.constant dense<0.000000e+00> : vector<32x32xf32>
    %7 = tpu.matmul %5, %6, %cst_10 {dimension_numbers = #tpu.dot_dimension_numbers<[1], [0], [0], [1], [0, 0, 1, 1], [], []>} : vector<32x16xbf16>, vector<16x32xbf16>, vector<32x32xf32> -> vector<32x32xf32>
    %8 = arith.truncf %7 : vector<32x32xf32> to vector<32x32xbf16>
    %c0_11 = arith.constant 0 : index
    %c0_12 = arith.constant 0 : index
    %9 = vector.load %arg3[%c0_11, %c0_12] : memref<32x64xbf16, #tpu.memory_space<vmem>>, vector<32x64xbf16>
    %cst_13 = arith.constant dense<0.000000e+00> : vector<32x64xf32>
    %10 = tpu.matmul %8, %9, %cst_13 {dimension_numbers = #tpu.dot_dimension_numbers<[1], [0], [0], [1], [0, 0, 1, 1], [], []>} : vector<32x32xbf16>, vector<32x64xbf16>, vector<32x64xf32> -> vector<32x64xf32>
    %c0_14 = arith.constant 0 : index
    %c0_15 = arith.constant 0 : index
    %11 = vector.load %arg1[%c0_14, %c0_15] : memref<32x64xf32, #tpu.memory_space<vmem>>, vector<32x64xf32>
    %12 = tpu.concatenate %10, %11 in 1 : vector<32x64xf32>, vector<32x64xf32> -> vector<32x128xf32>
    %13 = vector.extract_strided_slice %4 {offsets = [0, 0], sizes = [1, 128], strides = [1, 1]} : vector<10x128xf32> to vector<1x128xf32>
    %14 = vector.broadcast %13 : vector<1x128xf32> to vector<32x128xf32>
    %15 = arith.mulf %12, %14 : vector<32x128xf32>
    %16 = vector.extract_strided_slice %4 {offsets = [1, 0], sizes = [1, 128], strides = [1, 1]} : vector<10x128xf32> to vector<1x128xf32>
    %17 = vector.broadcast %16 : vector<1x128xf32> to vector<32x128xf32>
    %18 = arith.addf %15, %17 : vector<32x128xf32>
    %cst_16 = arith.constant 0.000000e+00 : f32
    %19 = vector.broadcast %cst_16 : f32 to vector<32x128xf32>
    %20 = arith.maximumf %18, %19 : vector<32x128xf32>
    %21 = arith.truncf %20 : vector<32x128xf32> to vector<32x128xbf16>
    %22 = vector.extract_strided_slice %21 {offsets = [0, 0], sizes = [16, 128], strides = [1, 1]} : vector<32x128xbf16> to vector<16x128xbf16>
    %c1 = arith.constant 1 : index
    %c0_17 = arith.constant 0 : index
    %23 = vector.load %arg10[%c1, %c0_17] : memref<36x128xbf16, #tpu.memory_space<vmem>>, vector<16x128xbf16>
    tpu.vector_store %arg10[%c1, %c0_17], %22 {strides = array<i32>} : memref<36x128xbf16, #tpu.memory_space<vmem>>, vector<16x128xbf16>,
    %24 = vector.extract_strided_slice %21 {offsets = [16, 0], sizes = [16, 128], strides = [1, 1]} : vector<32x128xbf16> to vector<16x128xbf16>
    %c19 = arith.constant 19 : index
    %c0_18 = arith.constant 0 : index
    %25 = vector.load %arg10[%c19, %c0_18] : memref<36x128xbf16, #tpu.memory_space<vmem>>, vector<16x128xbf16>
    tpu.vector_store %arg10[%c19, %c0_18], %24 {strides = array<i32>} : memref<36x128xbf16, #tpu.memory_space<vmem>>, vector<16x128xbf16>,
    %c0_19 = arith.constant 0 : index
    %c0_20 = arith.constant 0 : index
    %26 = vector.load %arg10[%c0_19, %c0_20] : memref<36x128xbf16, #tpu.memory_space<vmem>>, vector<16x128xbf16>
    %c1_21 = arith.constant 1 : index
    %c0_22 = arith.constant 0 : index
    %27 = vector.load %arg10[%c1_21, %c0_22] : memref<36x128xbf16, #tpu.memory_space<vmem>>, vector<16x128xbf16>
    %c2 = arith.constant 2 : index
    %c0_23 = arith.constant 0 : index
    %28 = vector.load %arg10[%c2, %c0_23] : memref<36x128xbf16, #tpu.memory_space<vmem>>, vector<16x128xbf16>
    %29 = tpu.concatenate %26, %27, %28 in 1 : vector<16x128xbf16>, vector<16x128xbf16>, vector<16x128xbf16> -> vector<16x384xbf16>
    %c18 = arith.constant 18 : index
    %c0_24 = arith.constant 0 : index
    %30 = vector.load %arg10[%c18, %c0_24] : memref<36x128xbf16, #tpu.memory_space<vmem>>, vector<16x128xbf16>
    %c19_25 = arith.constant 19 : index
    %c0_26 = arith.constant 0 : index
    %31 = vector.load %arg10[%c19_25, %c0_26] : memref<36x128xbf16, #tpu.memory_space<vmem>>, vector<16x128xbf16>
    %c20 = arith.constant 20 : index
    %c0_27 = arith.constant 0 : index
    %32 = vector.load %arg10[%c20, %c0_27] : memref<36x128xbf16, #tpu.memory_space<vmem>>, vector<16x128xbf16>
    %33 = tpu.concatenate %30, %31, %32 in 1 : vector<16x128xbf16>, vector<16x128xbf16>, vector<16x128xbf16> -> vector<16x384xbf16>
    %34 = tpu.concatenate %29, %33 in 0 : vector<16x384xbf16>, vector<16x384xbf16> -> vector<32x384xbf16>
    %c0_28 = arith.constant 0 : index
    %c0_29 = arith.constant 0 : index
    %35 = vector.load %arg5[%c0_28, %c0_29] : memref<384x128xbf16, #tpu.memory_space<vmem>>, vector<384x128xbf16>
    %cst_30 = arith.constant dense<0.000000e+00> : vector<32x128xf32>
    %36 = tpu.matmul %34, %35, %cst_30 {dimension_numbers = #tpu.dot_dimension_numbers<[1], [0], [0], [1], [0, 0, 1, 1], [], []>} : vector<32x384xbf16>, vector<384x128xbf16>, vector<32x128xf32> -> vector<32x128xf32>
    %37 = vector.extract_strided_slice %4 {offsets = [2, 0], sizes = [1, 128], strides = [1, 1]} : vector<10x128xf32> to vector<1x128xf32>
    %38 = vector.broadcast %37 : vector<1x128xf32> to vector<32x128xf32>
    %39 = arith.mulf %36, %38 : vector<32x128xf32>
    %40 = vector.extract_strided_slice %4 {offsets = [3, 0], sizes = [1, 128], strides = [1, 1]} : vector<10x128xf32> to vector<1x128xf32>
    %41 = vector.broadcast %40 : vector<1x128xf32> to vector<32x128xf32>
    %42 = arith.addf %39, %41 : vector<32x128xf32>
    %cst_31 = arith.constant 0.000000e+00 : f32
    %43 = vector.broadcast %cst_31 : f32 to vector<32x128xf32>
    %44 = arith.maximumf %42, %43 : vector<32x128xf32>
    %45 = arith.truncf %44 : vector<32x128xf32> to vector<32x128xbf16>
    %46 = vector.extract_strided_slice %45 {offsets = [0, 0], sizes = [16, 128], strides = [1, 1]} : vector<32x128xbf16> to vector<16x128xbf16>
    %c1_32 = arith.constant 1 : index
    %c0_33 = arith.constant 0 : index
    %47 = vector.load %arg11[%c1_32, %c0_33] : memref<36x128xbf16, #tpu.memory_space<vmem>>, vector<16x128xbf16>
    tpu.vector_store %arg11[%c1_32, %c0_33], %46 {strides = array<i32>} : memref<36x128xbf16, #tpu.memory_space<vmem>>, vector<16x128xbf16>,
    %48 = vector.extract_strided_slice %45 {offsets = [16, 0], sizes = [16, 128], strides = [1, 1]} : vector<32x128xbf16> to vector<16x128xbf16>
    %c19_34 = arith.constant 19 : index
    %c0_35 = arith.constant 0 : index
    %49 = vector.load %arg11[%c19_34, %c0_35] : memref<36x128xbf16, #tpu.memory_space<vmem>>, vector<16x128xbf16>
    tpu.vector_store %arg11[%c19_34, %c0_35], %48 {strides = array<i32>} : memref<36x128xbf16, #tpu.memory_space<vmem>>, vector<16x128xbf16>,
    %c0_36 = arith.constant 0 : index
    %c0_37 = arith.constant 0 : index
    %50 = vector.load %arg11[%c0_36, %c0_37] : memref<36x128xbf16, #tpu.memory_space<vmem>>, vector<16x128xbf16>
    %c1_38 = arith.constant 1 : index
    %c0_39 = arith.constant 0 : index
    %51 = vector.load %arg11[%c1_38, %c0_39] : memref<36x128xbf16, #tpu.memory_space<vmem>>, vector<16x128xbf16>
    %c2_40 = arith.constant 2 : index
    %c0_41 = arith.constant 0 : index
    %52 = vector.load %arg11[%c2_40, %c0_41] : memref<36x128xbf16, #tpu.memory_space<vmem>>, vector<16x128xbf16>
    %53 = tpu.concatenate %50, %51, %52 in 1 : vector<16x128xbf16>, vector<16x128xbf16>, vector<16x128xbf16> -> vector<16x384xbf16>
    %c18_42 = arith.constant 18 : index
    %c0_43 = arith.constant 0 : index
    %54 = vector.load %arg11[%c18_42, %c0_43] : memref<36x128xbf16, #tpu.memory_space<vmem>>, vector<16x128xbf16>
    %c19_44 = arith.constant 19 : index
    %c0_45 = arith.constant 0 : index
    %55 = vector.load %arg11[%c19_44, %c0_45] : memref<36x128xbf16, #tpu.memory_space<vmem>>, vector<16x128xbf16>
    %c20_46 = arith.constant 20 : index
    %c0_47 = arith.constant 0 : index
    %56 = vector.load %arg11[%c20_46, %c0_47] : memref<36x128xbf16, #tpu.memory_space<vmem>>, vector<16x128xbf16>
    %57 = tpu.concatenate %54, %55, %56 in 1 : vector<16x128xbf16>, vector<16x128xbf16>, vector<16x128xbf16> -> vector<16x384xbf16>
    %58 = tpu.concatenate %53, %57 in 0 : vector<16x384xbf16>, vector<16x384xbf16> -> vector<32x384xbf16>
    %59 = arith.truncf %10 : vector<32x64xf32> to vector<32x64xbf16>
    %60 = tpu.concatenate %58, %59 in 1 : vector<32x384xbf16>, vector<32x64xbf16> -> vector<32x448xbf16>
    %c0_48 = arith.constant 0 : index
    %c0_49 = arith.constant 0 : index
    %61 = vector.load %arg6[%c0_48, %c0_49] : memref<448x128xbf16, #tpu.memory_space<vmem>>, vector<448x128xbf16>
    %cst_50 = arith.constant dense<0.000000e+00> : vector<32x128xf32>
    %62 = tpu.matmul %60, %61, %cst_50 {dimension_numbers = #tpu.dot_dimension_numbers<[1], [0], [0], [1], [0, 0, 1, 1], [], []>} : vector<32x448xbf16>, vector<448x128xbf16>, vector<32x128xf32> -> vector<32x128xf32>
    %63 = vector.extract_strided_slice %4 {offsets = [4, 0], sizes = [1, 128], strides = [1, 1]} : vector<10x128xf32> to vector<1x128xf32>
    %64 = vector.broadcast %63 : vector<1x128xf32> to vector<32x128xf32>
    %65 = arith.addf %62, %64 : vector<32x128xf32>
    %66 = vector.extract_strided_slice %4 {offsets = [5, 0], sizes = [1, 128], strides = [1, 1]} : vector<10x128xf32> to vector<1x128xf32>
    %67 = vector.broadcast %66 : vector<1x128xf32> to vector<32x128xf32>
    %68 = arith.mulf %65, %67 : vector<32x128xf32>
    %69 = vector.extract_strided_slice %4 {offsets = [6, 0], sizes = [1, 128], strides = [1, 1]} : vector<10x128xf32> to vector<1x128xf32>
    %70 = vector.broadcast %69 : vector<1x128xf32> to vector<32x128xf32>
    %71 = arith.addf %68, %70 : vector<32x128xf32>
    %cst_51 = arith.constant 0.000000e+00 : f32
    %72 = vector.broadcast %cst_51 : f32 to vector<32x128xf32>
    %73 = arith.maximumf %71, %72 : vector<32x128xf32>
    %74 = arith.truncf %73 : vector<32x128xf32> to vector<32x128xbf16>
    %75 = vector.extract_strided_slice %74 {offsets = [0, 0], sizes = [16, 128], strides = [1, 1]} : vector<32x128xbf16> to vector<16x128xbf16>
    %c1_52 = arith.constant 1 : index
    %c0_53 = arith.constant 0 : index
    %76 = vector.load %arg11[%c1_52, %c0_53] : memref<36x128xbf16, #tpu.memory_space<vmem>>, vector<16x128xbf16>
    tpu.vector_store %arg11[%c1_52, %c0_53], %75 {strides = array<i32>} : memref<36x128xbf16, #tpu.memory_space<vmem>>, vector<16x128xbf16>,
    %77 = vector.extract_strided_slice %74 {offsets = [16, 0], sizes = [16, 128], strides = [1, 1]} : vector<32x128xbf16> to vector<16x128xbf16>
    %c19_54 = arith.constant 19 : index
    %c0_55 = arith.constant 0 : index
    %78 = vector.load %arg11[%c19_54, %c0_55] : memref<36x128xbf16, #tpu.memory_space<vmem>>, vector<16x128xbf16>
    tpu.vector_store %arg11[%c19_54, %c0_55], %77 {strides = array<i32>} : memref<36x128xbf16, #tpu.memory_space<vmem>>, vector<16x128xbf16>,
    %c0_56 = arith.constant 0 : index
    %c0_57 = arith.constant 0 : index
    %79 = vector.load %arg11[%c0_56, %c0_57] : memref<36x128xbf16, #tpu.memory_space<vmem>>, vector<16x128xbf16>
    %c1_58 = arith.constant 1 : index
    %c0_59 = arith.constant 0 : index
    %80 = vector.load %arg11[%c1_58, %c0_59] : memref<36x128xbf16, #tpu.memory_space<vmem>>, vector<16x128xbf16>
    %c2_60 = arith.constant 2 : index
    %c0_61 = arith.constant 0 : index
    %81 = vector.load %arg11[%c2_60, %c0_61] : memref<36x128xbf16, #tpu.memory_space<vmem>>, vector<16x128xbf16>
    %82 = tpu.concatenate %79, %80, %81 in 1 : vector<16x128xbf16>, vector<16x128xbf16>, vector<16x128xbf16> -> vector<16x384xbf16>
    %c18_62 = arith.constant 18 : index
    %c0_63 = arith.constant 0 : index
    %83 = vector.load %arg11[%c18_62, %c0_63] : memref<36x128xbf16, #tpu.memory_space<vmem>>, vector<16x128xbf16>
    %c19_64 = arith.constant 19 : index
    %c0_65 = arith.constant 0 : index
    %84 = vector.load %arg11[%c19_64, %c0_65] : memref<36x128xbf16, #tpu.memory_space<vmem>>, vector<16x128xbf16>
    %c20_66 = arith.constant 20 : index
    %c0_67 = arith.constant 0 : index
    %85 = vector.load %arg11[%c20_66, %c0_67] : memref<36x128xbf16, #tpu.memory_space<vmem>>, vector<16x128xbf16>
    %86 = tpu.concatenate %83, %84, %85 in 1 : vector<16x128xbf16>, vector<16x128xbf16>, vector<16x128xbf16> -> vector<16x384xbf16>
    %87 = tpu.concatenate %82, %86 in 0 : vector<16x384xbf16>, vector<16x384xbf16> -> vector<32x384xbf16>
    %c0_68 = arith.constant 0 : index
    %c0_69 = arith.constant 0 : index
    %88 = vector.load %arg7[%c0_68, %c0_69] : memref<384x128xbf16, #tpu.memory_space<vmem>>, vector<384x128xbf16>
    %cst_70 = arith.constant dense<0.000000e+00> : vector<32x128xf32>
    %89 = tpu.matmul %87, %88, %cst_70 {dimension_numbers = #tpu.dot_dimension_numbers<[1], [0], [0], [1], [0, 0, 1, 1], [], []>} : vector<32x384xbf16>, vector<384x128xbf16>, vector<32x128xf32> -> vector<32x128xf32>
    %90 = vector.extract_strided_slice %4 {offsets = [7, 0], sizes = [1, 128], strides = [1, 1]} : vector<10x128xf32> to vector<1x128xf32>
    %91 = vector.broadcast %90 : vector<1x128xf32> to vector<32x128xf32>
    %92 = arith.mulf %89, %91 : vector<32x128xf32>
    %93 = vector.extract_strided_slice %4 {offsets = [8, 0], sizes = [1, 128], strides = [1, 1]} : vector<10x128xf32> to vector<1x128xf32>
    %94 = vector.broadcast %93 : vector<1x128xf32> to vector<32x128xf32>
    %95 = arith.addf %92, %94 : vector<32x128xf32>
    %cst_71 = arith.constant 0.000000e+00 : f32
    %96 = vector.broadcast %cst_71 : f32 to vector<32x128xf32>
    %97 = arith.maximumf %95, %96 : vector<32x128xf32>
    %98 = arith.truncf %97 : vector<32x128xf32> to vector<32x128xbf16>
    %99 = vector.extract_strided_slice %98 {offsets = [0, 0], sizes = [16, 128], strides = [1, 1]} : vector<32x128xbf16> to vector<16x128xbf16>
    %c1_72 = arith.constant 1 : index
    %c0_73 = arith.constant 0 : index
    %100 = vector.load %arg11[%c1_72, %c0_73] : memref<36x128xbf16, #tpu.memory_space<vmem>>, vector<16x128xbf16>
    tpu.vector_store %arg11[%c1_72, %c0_73], %99 {strides = array<i32>} : memref<36x128xbf16, #tpu.memory_space<vmem>>, vector<16x128xbf16>,
    %101 = vector.extract_strided_slice %98 {offsets = [16, 0], sizes = [16, 128], strides = [1, 1]} : vector<32x128xbf16> to vector<16x128xbf16>
    %c19_74 = arith.constant 19 : index
    %c0_75 = arith.constant 0 : index
    %102 = vector.load %arg11[%c19_74, %c0_75] : memref<36x128xbf16, #tpu.memory_space<vmem>>, vector<16x128xbf16>
    tpu.vector_store %arg11[%c19_74, %c0_75], %101 {strides = array<i32>} : memref<36x128xbf16, #tpu.memory_space<vmem>>, vector<16x128xbf16>,
    %c0_76 = arith.constant 0 : index
    %c0_77 = arith.constant 0 : index
    %103 = vector.load %arg11[%c0_76, %c0_77] : memref<36x128xbf16, #tpu.memory_space<vmem>>, vector<16x128xbf16>
    %c1_78 = arith.constant 1 : index
    %c0_79 = arith.constant 0 : index
    %104 = vector.load %arg11[%c1_78, %c0_79] : memref<36x128xbf16, #tpu.memory_space<vmem>>, vector<16x128xbf16>
    %c2_80 = arith.constant 2 : index
    %c0_81 = arith.constant 0 : index
    %105 = vector.load %arg11[%c2_80, %c0_81] : memref<36x128xbf16, #tpu.memory_space<vmem>>, vector<16x128xbf16>
    %106 = tpu.concatenate %103, %104, %105 in 1 : vector<16x128xbf16>, vector<16x128xbf16>, vector<16x128xbf16> -> vector<16x384xbf16>
    %c18_82 = arith.constant 18 : index
    %c0_83 = arith.constant 0 : index
    %107 = vector.load %arg11[%c18_82, %c0_83] : memref<36x128xbf16, #tpu.memory_space<vmem>>, vector<16x128xbf16>
    %c19_84 = arith.constant 19 : index
    %c0_85 = arith.constant 0 : index
    %108 = vector.load %arg11[%c19_84, %c0_85] : memref<36x128xbf16, #tpu.memory_space<vmem>>, vector<16x128xbf16>
    %c20_86 = arith.constant 20 : index
    %c0_87 = arith.constant 0 : index
    %109 = vector.load %arg11[%c20_86, %c0_87] : memref<36x128xbf16, #tpu.memory_space<vmem>>, vector<16x128xbf16>
    %110 = tpu.concatenate %107, %108, %109 in 1 : vector<16x128xbf16>, vector<16x128xbf16>, vector<16x128xbf16> -> vector<16x384xbf16>
    %111 = tpu.concatenate %106, %110 in 0 : vector<16x384xbf16>, vector<16x384xbf16> -> vector<32x384xbf16>
    %c0_88 = arith.constant 0 : index
    %c0_89 = arith.constant 0 : index
    %112 = vector.load %arg8[%c0_88, %c0_89] : memref<384x128xbf16, #tpu.memory_space<vmem>>, vector<384x128xbf16>
    %cst_90 = arith.constant dense<0.000000e+00> : vector<32x128xf32>
    %113 = tpu.matmul %111, %112, %cst_90 {dimension_numbers = #tpu.dot_dimension_numbers<[1], [0], [0], [1], [0, 0, 1, 1], [], []>} : vector<32x384xbf16>, vector<384x128xbf16>, vector<32x128xf32> -> vector<32x128xf32>
    %114 = vector.extract_strided_slice %4 {offsets = [9, 0], sizes = [1, 128], strides = [1, 1]} : vector<10x128xf32> to vector<1x128xf32>
    %115 = vector.broadcast %114 : vector<1x128xf32> to vector<32x128xf32>
    %116 = arith.addf %113, %115 : vector<32x128xf32>
    %117 = arith.addf %65, %116 : vector<32x128xf32>
    %c0_91 = arith.constant 0 : index
    %c0_92 = arith.constant 0 : index
    %118 = vector.load %arg9[%c0_91, %c0_92] : memref<32x128xf32, #tpu.memory_space<vmem>>, vector<32x128xf32>
    tpu.vector_store %arg9[%c0_91, %c0_92], %117 {strides = array<i32>} : memref<32x128xf32, #tpu.memory_space<vmem>>, vector<32x128xf32>,
    return
  }
}

</mosaic_0001>

<bundles_post_ra>
// kernel: tile.63
= control target key start
LH: loop header
LB: loop body
LE: loop exit
PB: predicated region body
PF: predicated region fallthrough
CT: control target
= control target key end

     0   :  { %s28_s0 = inlined_call_operand.vmem [shape: f32[4], index: 0, kind: input, shape index: {}]   ;;  %s29_s1 = inlined_call_operand.vmem [shape: f32[16,4], index: 1, kind: output, shape index: {}]  }
   0x1   :  { %v4_v0 = vld [vmem:[%s28_s0] ss:$0 sm:$0xff] }
   0x2   :  { %5 = vst [vmem:[%s29_s1] sm:$0xff] %v4_v0  ;;  %8 = vst [vmem:[%s29_s1 + $0x8] sm:$0xff] %v4_v0 }

// kernel: tile.64
= control target key start
LH: loop header
LB: loop body
LE: loop exit
PB: predicated region body
PF: predicated region fallthrough
CT: control target
= control target key end

     0   :  { %s133_s10 = smov 60   ;;  %s134_s11 = smov 52   ;;  %vm3_vm0 = vcmask 31744   ;;  %vm9_vm1 = vcmask 523744   ;;  %vm15_vm2 = vcmask 490944   ;;  %vm21_vm3 = vcmask 458144   ;;  %s209_s0 = inlined_call_operand.vmem [shape: f32[16,4], index: 0, kind: input, shape index: {}]   ;;  %s210_s1 = inlined_call_operand.vmem [shape: f32[64], index: 1, kind: output, shape index: {}]  }
   0x1   :  { %v103_v0 = vld [vmem:[%s209_s0 + $0xf] sm:$0x1]   ;;  %v105_v1 = vld [vmem:[%s209_s0 + $0xd] sm:$0x1]   ;;  %v104_v2 = vld [vmem:[%s209_s0 + $0xe] sm:$0x1]  }
   0x2   :  { %7 = vrot.lane.b32.xlu0 %v103_v0, %s133_s10  ;;  %19 = vrot.lane.b32.xlu1 %v105_v1, %s134_s11  ;;  %v106_v3 = vld [vmem:[%s209_s0 + $0xc] sm:$0x1]   ;;  %s135_s16 = smov 56   ;;  %s136_s17 = smov 48   ;;  %v107_v4 = vld [vmem:[%s209_s0 + $0xb] sm:$0x1]  }
   0x3   :  { %v108_v5 = vld [vmem:[%s209_s0 + $0xa] sm:$0x1]   ;;  %v2_v6 = vld [vmem:[%s209_s0] sm:$0x1]   ;;  %s137_s24 = smov 44   ;;  %s138_s25 = smov 40  }
   0x4   :  { %4 = vst.msk [vmem:[#allocation0] sm:$0x1] %vm3_vm0, %v2_v6   ;;  %v109_v7 = vld [vmem:[%s209_s0 + $0x9] sm:$0x1]   ;;  %v110_v8 = vld [vmem:[%s209_s0 + $0x8] sm:$0x1]  }
   0x5   :  { %s139_s30 = smov 36   ;;  %s140_s2 = smov 32   ;;  %v111_v9 = vld [vmem:[%s209_s0 + $0x7] sm:$0x1]   ;;  %v112_v10 = vld [vmem:[%s209_s0 + $0x6] sm:$0x1]  }
   0x6   :  { %13 = vrot.lane.b32.xlu0 %v104_v2, %s135_s16  ;;  %25 = vrot.lane.b32.xlu1 %v106_v3, %s136_s17  ;;  %s141_s7 = smov 28   ;;  %s142_s8 = smov 24   ;;  %v113_v11 = vld [vmem:[%s209_s0 + $0x5] sm:$0x1]   ;;  %v114_v12 = vld [vmem:[%s209_s0 + $0x4] sm:$0x1]  }
   0x7   :  { %s143_s13 = smov 20   ;;  %s144_s14 = smov 16   ;;  %v115_v13 = vld [vmem:[%s209_s0 + $0x3] sm:$0x1]   ;;  %v116_v14 = vld [vmem:[%s209_s0 + $0x2] sm:$0x1]  }
   0x8   :  { %s145_s19 = smov 12   ;;  %s146_s20 = smov 8   ;;  %v117_v15 = vld [vmem:[%s209_s0 + $0x1] sm:$0x1]   ;;  %vm27_vm4 = vcmask 425344   ;;  %vm33_vm5 = vcmask 392544  }
   0x9   :  { %s147_s0 = smov 4   ;;  %vm39_vm6 = vcmask 359744   ;;  %vm45_vm7 = vcmask 326944   ;;  %vm51_vm8 = vcmask 294144   ;;  %vm57_vm9 = vcmask 261344  }
   0xa   :  { %31 = vrot.lane.b32.xlu0 %v107_v4, %s137_s24  ;;  %37 = vrot.lane.b32.xlu1 %v108_v5, %s138_s25  ;;  %vm63_vm10 = vcmask 228544   ;;  %vm69_vm11 = vcmask 195744   ;;  %vm75_vm12 = vcmask 162944   ;;  %vm81_vm13 = vcmask 130144  }
   0xb   :  { %vm87_vm14 = vcmask 97344   ;;  %vm93_vm15 = vcmask 64544  }
   0xe   :  { %43 = vrot.lane.b32.xlu0 %v109_v7, %s139_s30  ;;  %49 = vrot.lane.b32.xlu1 %v110_v8, %s140_s2 }
  0x12   :  { %55 = vrot.lane.b32.xlu0 %v111_v9, %s141_s7  ;;  %61 = vrot.lane.b32.xlu1 %v112_v10, %s142_s8 }
  0x16   :  { %67 = vrot.lane.b32.xlu0 %v113_v11, %s143_s13  ;;  %73 = vrot.lane.b32.xlu1 %v114_v12, %s144_s14 }
  0x1a   :  { %79 = vrot.lane.b32.xlu0 %v115_v13, %s145_s19  ;;  %85 = vrot.lane.b32.xlu1 %v116_v14, %s146_s20 }
  0x1e   :  { %91 = vrot.lane.b32.xlu0 %v117_v15, %s147_s0 }
  0x74   :  { %v8_v16 = vpop.permute.xlu0 %7   ;;  %v20_v17 = vpop.permute.xlu1 %19  }
  0x75   :  { %10 = vst.msk [vmem:[#allocation0] sm:$0x1] %vm9_vm1, %v8_v16  }
  0x78   :  { %v14_v18 = vpop.permute.xlu0 %13   ;;  %v26_v19 = vpop.permute.xlu1 %25  }
  0x79   :  { %16 = vst.msk [vmem:[#allocation0] sm:$0x1] %vm15_vm2, %v14_v18  }
  0x7a   :  { %22 = vst.msk [vmem:[#allocation0] sm:$0x1] %vm21_vm3, %v20_v17  }
  0x7b   :  { %28 = vst.msk [vmem:[#allocation0] sm:$0x1] %vm27_vm4, %v26_v19  }
  0x7c   :  { %v32_v20 = vpop.permute.xlu0 %31   ;;  %v38_v21 = vpop.permute.xlu1 %37  }
  0x7d   :  { %34 = vst.msk [vmem:[#allocation0] sm:$0x1] %vm33_vm5, %v32_v20  }
  0x7e   :  { %40 = vst.msk [vmem:[#allocation0] sm:$0x1] %vm39_vm6, %v38_v21  }
  0x80   :  { %v44_v22 = vpop.permute.xlu0 %43   ;;  %v50_v23 = vpop.permute.xlu1 %49  }
  0x81   :  { %46 = vst.msk [vmem:[#allocation0] sm:$0x1] %vm45_vm7, %v44_v22  }
  0x82   :  { %52 = vst.msk [vmem:[#allocation0] sm:$0x1] %vm51_vm8, %v50_v23  }
  0x84   :  { %v56_v24 = vpop.permute.xlu0 %55   ;;  %v62_v25 = vpop.permute.xlu1 %61  }
  0x85   :  { %58 = vst.msk [vmem:[#allocation0] sm:$0x1] %vm57_vm9, %v56_v24  }
  0x86   :  { %64 = vst.msk [vmem:[#allocation0] sm:$0x1] %vm63_vm10, %v62_v25  }
  0x88   :  { %v68_v26 = vpop.permute.xlu0 %67   ;;  %v74_v27 = vpop.permute.xlu1 %73  }
  0x89   :  { %70 = vst.msk [vmem:[#allocation0] sm:$0x1] %vm69_vm11, %v68_v26  }
  0x8a   :  { %76 = vst.msk [vmem:[#allocation0] sm:$0x1] %vm75_vm12, %v74_v27  }
  0x8c   :  { %v80_v28 = vpop.permute.xlu0 %79   ;;  %v86_v29 = vpop.permute.xlu1 %85  }
  0x8d   :  { %82 = vst.msk [vmem:[#allocation0] sm:$0x1] %vm81_vm13, %v80_v28  }
  0x8e   :  { %88 = vst.msk [vmem:[#allocation0] sm:$0x1] %vm87_vm14, %v86_v29  }
  0x90   :  { %v92_v30 = vpop.permute.xlu0 %91  }
  0x91   :  { %94 = vst.msk [vmem:[#allocation0] sm:$0x1] %vm93_vm15, %v92_v30  }
  0x98   :  { %v99_v31 = vld [vmem:[#allocation0] sm:$0x1] }
  0x99   :  { %102 = vst [vmem:[%s210_s1] sm:$0x1] %v99_v31 }

// kernel: tile.88
= control target key start
LH: loop header
LB: loop body
LE: loop exit
PB: predicated region body
PF: predicated region fallthrough
CT: control target
= control target key end

     0   :  { %s28_s0 = inlined_call_operand.vmem [shape: f32[8], index: 0, kind: input, shape index: {}]   ;;  %s29_s1 = inlined_call_operand.vmem [shape: f32[16,8], index: 1, kind: output, shape index: {}]  }
   0x1   :  { %v4_v0 = vld [vmem:[%s28_s0] ss:$0 sm:$0xff] }
   0x2   :  { %5 = vst [vmem:[%s29_s1] sm:$0xff] %v4_v0  ;;  %8 = vst [vmem:[%s29_s1 + $0x8] sm:$0xff] %v4_v0 }

// kernel: psp_upsample_forward.1
= control target key start
LH: loop header
LB: loop body
LE: loop exit
PB: predicated region body
PF: predicated region fallthrough
CT: control target
= control target key end

     0   :  { %vm67_vm0 = vcmask 130048   ;;  %v2668_v7 = vmov 0   ;;  %vm141_vm1 = vcmask 261120   ;;  %v222_v40 = vlaneseq  ;;  %s3275_s0 = inlined_call_operand.vmem [shape: bf16[16,32], index: 0, kind: input, shape index: {}]   ;;  %s3276_s2 = inlined_call_operand.vmem [shape: bf16[32,16], index: 2, kind: input, shape index: {}]   ;;  %s3277_s3 = inlined_call_operand.vmem [shape: bf16[32,64], index: 3, kind: input, shape index: {}]   ;;  %s3278_s1 = inlined_call_operand.vmem [shape: f32[32,64], index: 1, kind: input, shape index: {}]   ;;  %s3279_s5 = inlined_call_operand.vmem [shape: bf16[384,128], index: 5, kind: input, shape index: {}]   ;;  %s3280_s6 = inlined_call_operand.vmem [shape: bf16[448,128], index: 6, kind: input, shape index: {}]   ;;  %s3281_s4 = inlined_call_operand.vmem [shape: f32[10,128], index: 4, kind: input, shape index: {}]   ;;  %s3282_s7 = inlined_call_operand.vmem [shape: bf16[384,128], index: 7, kind: input, shape index: {}]   ;;  %s3283_s8 = inlined_call_operand.vmem [shape: bf16[384,128], index: 8, kind: input, shape index: {}]   ;;  %s3284_s9 = inlined_call_operand.vmem [shape: f32[32,128], index: 9, kind: output, shape index: {}]  }
   0x1   :  { %v2534_v0 = vld [vmem:[%s3275_s0] sm:$0xff]   ;;  %v2536_v2 = vld [vmem:[%s3276_s2 + $0x8] sm:$0xff]   ;;  %v199_v5 = vld [vmem:[%s3278_s1 + $0x10] sm:$0xff]  ;;  %35 = vst [vmem:[#allocation2 + $0x8] sm:$0xf] %v2668_v7  ;;  %vm217_vm2 = vcmask 523264  }
   0x2   :  { %v2535_v1 = vld [vmem:[%s3276_s2] sm:$0xff]   ;;  %2458 = vmatprep.subr.bf16.mxu0 %v2534_v0  ;;  %v2537_v3 = vld [vmem:[%s3277_s3 + $0x8] sm:$0xff]   ;;  %33 = vst [vmem:[#allocation2] sm:$0xf] %v2668_v7  ;;  %34 = vst [vmem:[#allocation2 + $0x4] sm:$0xf] %v2668_v7 }
   0x3   :  { %2459 = vmatpush3.bf16.msra.mxu0 %v2534_v0  ;;  %2460 = vmatprep.mubr.msk.bf16.mxu0 %vm67_vm0, %v2535_v1  ;;  %v2538_v4 = vld [vmem:[%s3277_s3] sm:$0xff]   ;;  %36 = vst [vmem:[#allocation2 + $0xc] sm:$0xf] %v2668_v7  ;;  %37 = vst [vmem:[#allocation2 + $0x10] sm:$0x3] %v2668_v7  ;;  %s2669_s3 = smov 64  }
   0x4   :  { %2464 = vmatprep.subr.bf16.mxu0 %v2537_v3  ;;  %v197_v6 = vld [vmem:[%s3278_s1] sm:$0xff]  ;;  %38 = vst [vmem:[#allocation3] sm:$0xf] %v2668_v7  ;;  %39 = vst [vmem:[#allocation3 + $0x4] sm:$0xf] %v2668_v7  ;;  %209 = vrot.lane.b32.xlu1 %v199_v5, %s2669_s3  ;;  %v200_v8 = vld [vmem:[%s3278_s1 + $0x18] sm:$0xff] }
   0x5   :  { %40 = vst [vmem:[#allocation3 + $0x8] sm:$0xf] %v2668_v7  ;;  %41 = vst [vmem:[#allocation3 + $0xc] sm:$0xf] %v2668_v7  ;;  %205 = vrot.lane.b32.xlu0 %v197_v6, %s2669_s3  ;;  %v198_v9 = vld [vmem:[%s3278_s1 + $0x8] sm:$0xff]  ;;  %v2539_v16 = vld [vmem:[%s3279_s5 + $0xb8] sm:$0xff]  }
   0x6   :  { %2461 = vmatmul.mubr.msk.bf16.vlgmr.msra.gmra.mxu0 %vm67_vm0, %v2536_v2  ;;  %42 = vst [vmem:[#allocation3 + $0x10] sm:$0x3] %v2668_v7  ;;  %2472 = vmatprep.subr.bf16.mxu1 %v2539_v16  ;;  %v2540_v17 = vld [vmem:[%s3279_s5 + $0x78] sm:$0xff]   ;;  %v2542_v19 = vld [vmem:[%s3279_s5 + $0xb0] sm:$0xff]   ;;  %v2545_v22 = vld [vmem:[%s3279_s5 + $0xa8] sm:$0xff]   ;;  %v2830_v41 = vshrl.u32 %v222_v40, 7 }
   0x7   :  { %2465 = vmatpush3.bf16.msra.mxu0 %v2537_v3  ;;  %2473 = vmatpush3.bf16.msra.mxu1 %v2539_v16  ;;  %v2541_v18 = vld [vmem:[%s3279_s5 + $0x38] sm:$0xff]   ;;  %v2543_v20 = vld [vmem:[%s3279_s5 + $0x70] sm:$0xff]   ;;  %v2546_v23 = vld [vmem:[%s3279_s5 + $0x68] sm:$0xff]   ;;  %vm314_vm3 = vcmask 1043457   ;;  %vm315_vm4 = vsmask.f32 7942 }
   0x8   :  { %2466 = vmatprep.subr.bf16.mxu0 %v2538_v4  ;;  %211 = vrot.lane.b32.xlu1 %v200_v8, %s2669_s3  ;;  %v2544_v21 = vld [vmem:[%s3279_s5 + $0x30] sm:$0xff]   ;;  %v2547_v24 = vld [vmem:[%s3279_s5 + $0x28] sm:$0xff]   ;;  %v2548_v25 = vld [vmem:[%s3279_s5 + $0xa0] sm:$0xff]   ;;  %v224_v42 = vsub.s32 0, %v2830_v41  ;;  %v232_v45 = vsub.s32 1, %v2830_v41  ;;  %vm272_vm5 = vcmask 1043456  }
   0x9   :  { %207 = vrot.lane.b32.xlu0 %v198_v9, %s2669_s3  ;;  %2474 = vmatprep.subr.bf16.mxu1 %v2542_v19  ;;  %v2549_v26 = vld [vmem:[%s3279_s5 + $0x60] sm:$0xff]   ;;  %v2551_v28 = vld [vmem:[%s3279_s5 + $0x98] sm:$0xff]   ;;  %v2554_v31 = vld [vmem:[%s3279_s5 + $0x90] sm:$0xff]   ;;  %vm273_vm6 = vsmask.f32 7938  ;;  %vm321_vm11 = vcmask 1041408  }
   0xa   :  { %v2550_v27 = vld [vmem:[%s3279_s5 + $0x20] sm:$0xff]   ;;  %v2552_v29 = vld [vmem:[%s3279_s5 + $0x58] sm:$0xff]   ;;  %v2555_v32 = vld [vmem:[%s3279_s5 + $0x50] sm:$0xff]   ;;  %vm289_vm8 = vsmask.f32 1280  ;;  %vm279_vm15 = vcmask 1040384  }
   0xb   :  { %2467 = vmatpush3.bf16.msra.mxu0 %v2538_v4  ;;  %2475 = vmatpush3.bf16.msra.mxu1 %v2542_v19  ;;  %v2553_v30 = vld [vmem:[%s3279_s5 + $0x18] sm:$0xff]   ;;  %v2556_v33 = vld [vmem:[%s3279_s5 + $0x10] sm:$0xff]   ;;  %v2557_v34 = vld [vmem:[%s3279_s5 + $0x88] sm:$0xff]   ;;  %vm290_vm9 = vsmask.f32 5392 }
   0xc   :  { %2316 = vmatprep.subr.bf16.mxu0 %v2540_v17  ;;  %2476 = vmatprep.subr.bf16.mxu1 %v2545_v22  ;;  %v2558_v35 = vld [vmem:[%s3279_s5 + $0x48] sm:$0xff]   ;;  %v2560_v37 = vld [vmem:[%s3279_s5 + $0x80] sm:$0xff]   ;;  %vm2863_vm7 = vmand %vm314_vm3, %vm315_vm4  ;;  %vm249_vm12 = vsmask.f32 256  ;;  %vm250_vm13 = vsmask.f32 4368 }
   0xd   :  { %v2559_v36 = vld [vmem:[%s3279_s5 + $0x8] sm:$0xff]   ;;  %v2564_v38 = vld [vmem:[%s3279_s5 + $0x40] sm:$0xff]   ;;  %vm2868_vm10 = vmand %vm272_vm5, %vm273_vm6  ;;  %vm356_vm4 = vcmask 1046528   ;;  %vm339_vm5 = vsmask.f32 7424 }
   0xe   :  { %v2565_v39 = vld [vmem:[%s3279_s5] sm:$0xff]   ;;  %v317_v16 = vld [vmem:[#allocation2 + $0x8] sm:$0xe]  ;;  %vm2875_vm14 = vmor %vm289_vm8, %vm290_vm9 }
   0xf   :  { %2477 = vmatpush3.bf16.msra.mxu1 %v2545_v22  ;;  %v2836_v43 = vld [vmem:[%s3281_s4] sm:$0xff]  ;;  %vm2882_vm0 = vmand %vm321_vm11, %vm289_vm8 }
  0x10   :  { %2478 = vmatprep.subr.bf16.mxu1 %v2548_v25  ;;  %v225_v46 = vrot.slane %v2836_v43, %v224_v42  ;;  %v233_v49 = vrot.slane %v2836_v43, %v232_v45  ;;  %vm2892_vm3 = vmand %vm279_vm15, %vm249_vm12 }
  0x13   :  { %2479 = vmatpush3.bf16.msra.mxu1 %v2548_v25 }
  0x14   :  { %2480 = vmatprep.subr.bf16.mxu1 %v2551_v28 }
  0x17   :  { %2481 = vmatpush3.bf16.msra.mxu1 %v2551_v28 }
  0x18   :  { %2482 = vmatprep.subr.bf16.mxu1 %v2554_v31 }
  0x1b   :  { %2483 = vmatpush3.bf16.msra.mxu1 %v2554_v31 }
  0x1c   :  { %2484 = vmatprep.subr.bf16.mxu1 %v2557_v34 }
  0x1f   :  { %2485 = vmatpush3.bf16.msra.mxu1 %v2557_v34 }
  0x20   :  { %2486 = vmatprep.subr.bf16.mxu1 %v2560_v37 }
  0x23   :  { %2487 = vmatpush3.bf16.msra.mxu1 %v2560_v37 }
  0x24   :  { %1155 = vmatprep.subr.bf16.mxu1 %v2668_v7 }
  0x76   :  { %v210_v44 = vpop.permute.xlu1 %209 }
  0x77   :  { %v206_v47 = vpop.permute.xlu0 %205 }
  0x7a   :  { %v212_v53 = vpop.permute.xlu1 %211 }
  0x7b   :  { %v208_v58 = vpop.permute.xlu0 %207 }
  0xc6   :  { %v2462_v10 = vpop.f32.mrf.mxu0 }
  0xc8   :  { %v108_v11 = vpop.f32.mrf.mxu0 }
  0xca   :  { %v2463_v12 = vpop.f32.mrf.mxu0 }
  0xcb   :  { %v124_v15 = vpack.c.bf16 %v2463_v12, %v2462_v10 }
  0xcc   :  { %v111_v13 = vpop.f32.mrf.mxu0 }
  0xcd   :  { %v123_v14 = vpack.c.bf16 %v111_v13, %v108_v11 }
  0xcf   :  { %2468 = vmatprep.mubr.msk.bf16.mxu0 %vm141_vm1, %v123_v14 }
  0xd0   :  { %2469 = vmatmul.mubr.msk.bf16.vlgmr.msra.gmra.mxu0 %vm141_vm1, %v124_v15  ;;  %vm2887_vm1 = vmor %vm249_vm12, %vm250_vm13 }
  0xd1   :  { %2317 = vmatpush3.bf16.msra.mxu0 %v2541_v18 }
  0xd2   :  { %2318 = vmatprep.subr.bf16.mxu0 %v2543_v20 }
  0xd5   :  { %2319 = vmatpush3.bf16.msra.mxu0 %v2544_v21 }
  0xd6   :  { %2320 = vmatprep.subr.bf16.mxu0 %v2546_v23  ;;  %v275_v23 = vld [vmem:[#allocation2] sm:$0xf] }
  0xd9   :  { %2321 = vmatpush3.bf16.msra.mxu0 %v2547_v24 }
  0xda   :  { %2322 = vmatprep.subr.bf16.mxu0 %v2549_v26 }
  0xdd   :  { %2323 = vmatpush3.bf16.msra.mxu0 %v2550_v27 }
  0xde   :  { %2324 = vmatprep.subr.bf16.mxu0 %v2552_v29 }
  0xe1   :  { %2325 = vmatpush3.bf16.msra.mxu0 %v2553_v30 }
  0xe2   :  { %2326 = vmatprep.subr.bf16.mxu0 %v2555_v32 }
  0xe5   :  { %2327 = vmatpush3.bf16.msra.mxu0 %v2556_v33 }
  0xe6   :  { %2328 = vmatprep.subr.bf16.mxu0 %v2558_v35 }
  0xe9   :  { %2329 = vmatpush3.bf16.msra.mxu0 %v2559_v36 }
  0xea   :  { %2330 = vmatprep.subr.bf16.mxu0 %v2564_v38 }
  0xed   :  { %2331 = vmatpush3.bf16.msra.mxu0 %v2565_v39 }
 0x190   :  { %v2842_v48 = vpop.f32.mrf.mxu0 }
 0x191   :  { %v220_v50 = vsel %vm217_vm2, %v2842_v48, %v210_v44  ;;  %v323_v44 = vld [vmem:[#allocation2 + $0x10] sm:$0x3] }
 0x192   :  { %v228_v51 = vmul.f32 %v225_v46, %v220_v50  ;;  %v2849_v52 = vpop.f32.mrf.mxu0 }
 0x193   :  { %v218_v54 = vsel %vm217_vm2, %v2849_v52, %v206_v47  ;;  %v281_v47 = vld [vmem:[#allocation2 + $0x8] sm:$0x1] }
 0x194   :  { %v236_v55 = vadd.f32 %v233_v49, %v228_v51  ;;  %v226_v56 = vmul.f32 %v225_v46, %v218_v54  ;;  %v2853_v57 = vpop.f32.mrf.mxu0 }
 0x195   :  { %v221_v59 = vsel %vm217_vm2, %v2853_v57, %v212_v53  ;;  %v871_v60 = vpack.c.bf16 %v2853_v57, %v2842_v48 }
 0x196   :  { %v240_v61 = vmax.f32 %v236_v55, 0.0  ;;  %v234_v62 = vadd.f32 %v233_v49, %v226_v56  ;;  %v229_v63 = vmul.f32 %v225_v46, %v221_v59  ;;  %v2859_v0 = vpop.f32.mrf.mxu0 }
 0x197   :  { %v219_v1 = vsel %vm217_vm2, %v2859_v0, %v208_v58 }
 0x198   :  { %v2295_v2 = vpack.c.bf16 %v240_v61, %v240_v61  ;;  %v238_v3 = vmax.f32 %v234_v62, 0.0  ;;  %v237_v4 = vadd.f32 %v233_v49, %v229_v63  ;;  %v227_v5 = vmul.f32 %v225_v46, %v219_v1 }
 0x19a   :  { %v293_v6 = vshrl.u32 %v2295_v2, 16  ;;  %v296_v8 = vshll.u32 %v2295_v2, 16  ;;  %v2293_v9 = vpack.c.bf16 %v238_v3, %v238_v3  ;;  %v241_v10 = vmax.f32 %v237_v4, 0.0 }
 0x19b   :  { %v235_v11 = vadd.f32 %v233_v49, %v227_v5 }
 0x19c   :  { %v295_v12 = vrot.slane %v293_v6, 6  ;;  %v298_v13 = vrot.slane %v296_v8, 7  ;;  %v253_v14 = vshrl.u32 %v2293_v9, 16  ;;  %v2296_v17 = vpack.c.bf16 %v241_v10, %v241_v10 }
 0x19d   :  { %v239_v18 = vmax.f32 %v235_v11, 0.0  ;;  %v256_v21 = vshll.u32 %v2293_v9, 16 }
 0x19e   :  { %v299_v19 = vor.u32 %v298_v13, %v295_v12  ;;  %v255_v20 = vrot.slane %v253_v14, 7  ;;  %v302_v24 = vshrl.u32 %v2296_v17, 16  ;;  %v305_v25 = vshll.u32 %v2296_v17, 16 }
 0x19f   :  { %v2294_v26 = vpack.c.bf16 %v239_v18, %v239_v18 }
 0x1a0   :  { %v318_v27 = vsel %vm2863_vm7, %v299_v19, %v317_v16  ;;  %v258_v28 = vor.u32 %v256_v21, %v255_v20  ;;  %v304_v30 = vrot.slane %v302_v24, 6  ;;  %v307_v31 = vrot.slane %v305_v25, 7 }
 0x1a1   :  { %319 = vst [vmem:[#allocation2 + $0x8] sm:$0xe] %v318_v27  ;;  %v261_v32 = vshrl.u32 %v2294_v26, 16  ;;  %v300_v35 = vrot.slane %v299_v19, 4  ;;  %v264_v39 = vshll.u32 %v2294_v26, 16  ;;  %v259_v40 = vrot.slane %v255_v20, 4 }
 0x1a2   :  { %v276_v33 = vsel %vm2868_vm10, %v258_v28, %v275_v23  ;;  %v308_v36 = vor.u32 %v307_v31, %v304_v30  ;;  %v2570_v28 = vld [vmem:[%s3280_s6 + $0xb8] sm:$0xff]  }
 0x1a3   :  { %277 = vst [vmem:[#allocation2] sm:$0xf] %v276_v33  ;;  %v263_v38 = vrot.slane %v261_v32, 7  ;;  %v870_v32 = vpack.c.bf16 %v2859_v0, %v2849_v52 }
 0x1a4   :  { %v309_v49 = vsel %vm2875_vm14, %v300_v35, %v308_v36  ;;  %v310_v50 = vrot.slane %v308_v36, 4 }
 0x1a5   :  { %v266_v51 = vor.u32 %v264_v39, %v263_v38  ;;  %v268_v53 = vrot.slane %v263_v38, 4  ;;  %320 = vst [vmem:[#allocation2 + $0xc] sm:$0xf] %v309_v49 }
 0x1a6   :  { %v324_v54 = vsel %vm2882_vm0, %v310_v50, %v323_v44 }
 0x1a7   :  { %v267_v55 = vsel %vm2887_vm1, %v259_v40, %v266_v51  ;;  %v282_v56 = vsel %vm2892_vm3, %v268_v53, %v281_v47  ;;  %325 = vst [vmem:[#allocation2 + $0x10] sm:$0x3] %v324_v54  ;;  %v2571_v47 = vld [vmem:[%s3280_s6 + $0xb0] sm:$0xff]   ;;  %v2572_v54 = vld [vmem:[%s3280_s6 + $0xa8] sm:$0xff]  }
 0x1a8   :  { %278 = vst [vmem:[#allocation2 + $0x4] sm:$0xf] %v267_v55  ;;  %283 = vst [vmem:[#allocation2 + $0x8] sm:$0x1] %v282_v56  ;;  %v361_v58 = vld [vmem:[#allocation2 + $0x8] sm:$0xe] }
 0x1a9   :  { %v365_v61 = vld [vmem:[#allocation2 + $0x8] sm:$0xc]  ;;  %v2573_v55 = vld [vmem:[%s3280_s6 + $0xa0] sm:$0xff]   ;;  %v2574_v56 = vld [vmem:[%s3280_s6 + $0x98] sm:$0xff]  }
 0x1aa   :  { %v326_v62 = vld [vmem:[#allocation2] sm:$0xf] }
 0x1ab   :  { %v329_v63 = vld [vmem:[#allocation2] sm:$0xe] }
 0x1ac   :  { %v362_v59 = vld [vmem:[#allocation2 + $0xc] sm:$0xf] }
 0x1ad   :  { %v2154_v1 = vcombine.low %v361_v58, %v362_v59  ;;  %v2157_v2 = vcombine.low %v365_v61, %v362_v59  ;;  %v2575_v58 = vld [vmem:[%s3280_s6 + $0x78] sm:$0xff]   ;;  %v2576_v59 = vld [vmem:[%s3280_s6 + $0x90] sm:$0xff]  }
 0x1ae   :  { %v2567_v8 = vld [vmem:[#allocation2 + $0x10] ss:$0 sps:$4 sm:$0x33]   ;;  %v2577_v61 = vld [vmem:[%s3280_s6 + $0x38] sm:$0xff]   ;;  %2354 = vmatprep.subr.bf16.mxu0 %v2575_v58 }
 0x1af   :  { %v327_v3 = vld [vmem:[#allocation2 + $0x4] sm:$0xf]  ;;  %v2562_v5 = vld [vmem:[#allocation2 + $0x8] ss:$0 sps:$4 sm:$0x11]   ;;  %v395_v9 = vrot.slane %v2157_v2, 1 }
 0x1b0   :  { %v2151_v4 = vcombine.low %v326_v62, %v327_v3  ;;  %v2153_v6 = vcombine.low %v329_v63, %v327_v3  ;;  %v380_v10 = vshll.u32 %v2154_v1, 16  ;;  %v358_v12 = vrot.slane %v2562_v5, 1  ;;  %v2569_v0 = vld [vmem:[#allocation2 + $0x10] ss:$0 sps:$4 sm:$0x11]   ;;  %v2579_v63 = vld [vmem:[%s3280_s6 + $0x88] sm:$0xff]  }
 0x1b1   :  { %v396_v13 = vrot.slane %v2567_v8, 1  ;;  %v378_v14 = vshrl.u32 %v2154_v1, 16  ;;  %v348_v17 = vshll.u32 %v2562_v5, 16  ;;  %v385_v19 = vshll.u32 %v2567_v8, 16  ;;  %v2578_v62 = vld [vmem:[%s3280_s6 + $0x70] sm:$0xff]   ;;  %v2581_v2 = vld [vmem:[%s3280_s6 + $0x68] sm:$0xff]  }
 0x1b2   :  { %v357_v11 = vrot.slane %v2153_v6, 1  ;;  %v343_v16 = vshll.u32 %v2151_v4, 16  ;;  %v382_v18 = vrot.slane %v380_v10, 1  ;;  %v341_v25 = vshrl.u32 %v2151_v4, 16  ;;  %v2582_v3 = vld [vmem:[%s3280_s6 + $0x80] sm:$0xff]   ;;  %v2585_v6 = vld [vmem:[%s3280_s6 + $0xd8] sm:$0xff]  }
 0x1b3   :  { %v397_v21 = vsel %vm356_vm4, %v395_v9, %v396_v13  ;;  %v405_v23 = vrot.slane %v396_v13, 1  ;;  %v387_v30 = vrot.slane %v385_v19, 1  ;;  %v389_v31 = vshrl.u32 %v2567_v8, 16  ;;  %v2584_v5 = vld [vmem:[%s3280_s6 + $0x60] sm:$0xff]   ;;  %v2587_v9 = vld [vmem:[%s3280_s6 + $0x58] sm:$0xff]   ;;  %v2588_v10 = vld [vmem:[%s3280_s6 + $0xd0] sm:$0xff]  }
 0x1b4   :  { %v359_v20 = vsel %vm356_vm4, %v357_v11, %v358_v12  ;;  %v404_v24 = vrot.slane %v397_v21, 1  ;;  %v345_v26 = vrot.slane %v343_v16, 1  ;;  %v383_v27 = vor.u32 %v382_v18, %v378_v14  ;;  %v2586_v8 = vld [vmem:[%s3280_s6 + $0x20] sm:$0xff]   ;;  %v2589_v11 = vld [vmem:[%s3280_s6 + $0x18] sm:$0xff]   ;;  %v2590_v12 = vld [vmem:[%s3280_s6 + $0x50] sm:$0xff]  }
 0x1b5   :  { %2488 = vmatprep.mubr.bf16.mxu1 %v359_v20  ;;  %v350_v36 = vrot.slane %v348_v17, 1  ;;  %v391_v39 = vor.u32 %v389_v31, %v387_v30  ;;  %v398_v50 = vrot.slane %v2154_v1, 1  ;;  %v399_v51 = vrot.slane %v2569_v0, 1  ;;  %v2580_v1 = vld [vmem:[%s3280_s6 + $0x30] sm:$0xff]   ;;  %v2591_v13 = vld [vmem:[%s3280_s6 + $0xc8] sm:$0xff]   ;;  %v2594_v17 = vld [vmem:[%s3280_s6 + $0xc0] sm:$0xff]  }
 0x1b6   :  { %v406_v33 = vsel %vm356_vm4, %v404_v24, %v405_v23  ;;  %v346_v35 = vor.u32 %v345_v26, %v341_v25  ;;  %v388_v38 = vsel %vm339_vm5, %v383_v27, %v387_v30  ;;  %v2592_v14 = vld [vmem:[%s3280_s6 + $0x10] sm:$0xff]   ;;  %v2593_v16 = vld [vmem:[%s3280_s6 + $0x48] sm:$0xff]   ;;  %v2598_v19 = vld [vmem:[%s3280_s6 + $0x40] sm:$0xff]   ;;  %v702_v21 = vsub.s32 2, %v2830_v41 }
 0x1b7   :  { %2489 = vmatmul.mubr.bf16.vlgmr.msra.gmra.mxu1 %v406_v33  ;;  %v401_v44 = vrot.slane %v388_v38, 1  ;;  %v402_v52 = vrot.slane %v391_v39, 1  ;;  %v400_v53 = vsel %vm356_vm4, %v398_v50, %v399_v51  ;;  %v2595_v18 = vld [vmem:[%s3280_s6 + $0x8] sm:$0xff]   ;;  %v710_v25 = vsub.s32 3, %v2830_v41 }
 0x1b8   :  { %v351_v40 = vsel %vm339_vm5, %v346_v35, %v350_v36  ;;  %2221 = vmatprep.mubr.msk.bf16.mxu1 %vm217_vm2, %v870_v32  ;;  %1156 = vmatpush1.bf16.msra.mxu1 %v2570_v28  ;;  %v703_v28 = vrot.slane %v2836_v43, %v702_v21 }
 0x1b9   :  { %634 = vmatprep.mubr.bf16.mxu0 %v351_v40  ;;  %1157 = vmatprep.subr.bf16.mxu1 %v2668_v7  ;;  %v403_v49 = vsel %vm356_vm4, %v401_v44, %v402_v52  ;;  %v711_v33 = vrot.slane %v2836_v43, %v710_v25 }
 0x1ba   :  { %635 = vmatmul.mubr.bf16.vlgmr.msra.gmra.mxu0 %v2151_v4  ;;  %v2583_v4 = vld [vmem:[%s3280_s6 + $0x28] sm:$0xff]  }
 0x1bb   :  { %642 = vmatprep.mubr.bf16.mxu0 %v403_v49  ;;  %2355 = vmatpush3.bf16.msra.mxu0 %v2577_v61 }
 0x1bc   :  { %1158 = vmatpush1.bf16.msra.mxu1 %v2571_v47  ;;  %2356 = vmatprep.subr.bf16.mxu0 %v2578_v62 }
 0x1bd   :  { %1159 = vmatprep.subr.bf16.mxu1 %v2668_v7 }
 0x1bf   :  { %2357 = vmatpush3.bf16.msra.mxu0 %v2580_v1 }
 0x1c0   :  { %1160 = vmatpush1.bf16.msra.mxu1 %v2572_v54  ;;  %2358 = vmatprep.subr.bf16.mxu0 %v2581_v2 }
 0x1c1   :  { %1161 = vmatprep.subr.bf16.mxu1 %v2668_v7 }
 0x1c2   :  { %643 = vmatmul.mubr.bf16.gmra.mxu0 %v400_v53 }
 0x1c3   :  { %2359 = vmatpush3.bf16.msra.mxu0 %v2583_v4  ;;  %v747_v4 = vld [vmem:[#allocation3] sm:$0xf] }
 0x1c4   :  { %1162 = vmatpush1.bf16.msra.mxu1 %v2573_v55  ;;  %2360 = vmatprep.subr.bf16.mxu0 %v2584_v5 }
 0x1c5   :  { %1163 = vmatprep.subr.bf16.mxu1 %v2668_v7 }
 0x1c7   :  { %2361 = vmatpush3.bf16.msra.mxu0 %v2586_v8 }
 0x1c8   :  { %1164 = vmatpush1.bf16.msra.mxu1 %v2574_v56  ;;  %2362 = vmatprep.subr.bf16.mxu0 %v2587_v9 }
 0x1c9   :  { %1165 = vmatprep.subr.bf16.mxu1 %v2668_v7 }
 0x1cb   :  { %2363 = vmatpush3.bf16.msra.mxu0 %v2589_v11 }
 0x1cc   :  { %1166 = vmatpush1.bf16.msra.mxu1 %v2576_v59  ;;  %2364 = vmatprep.subr.bf16.mxu0 %v2590_v12 }
 0x1cd   :  { %1167 = vmatprep.subr.bf16.mxu1 %v2668_v7 }
 0x1cf   :  { %2365 = vmatpush3.bf16.msra.mxu0 %v2592_v14  ;;  %v751_v14 = vld [vmem:[#allocation3 + $0x8] sm:$0x1] }
 0x1d0   :  { %1168 = vmatpush1.bf16.msra.mxu1 %v2579_v63  ;;  %2366 = vmatprep.subr.bf16.mxu0 %v2593_v16 }
 0x1d1   :  { %1169 = vmatprep.subr.bf16.mxu1 %v2668_v7 }
 0x1d3   :  { %2367 = vmatpush3.bf16.msra.mxu0 %v2595_v18 }
 0x1d4   :  { %1170 = vmatpush1.bf16.msra.mxu1 %v2582_v3  ;;  %2368 = vmatprep.subr.bf16.mxu0 %v2598_v19 }
 0x1d5   :  { %1179 = vmatprep.subr.bf16.mxu1 %v2668_v7 }
 0x1d8   :  { %1180 = vmatpush2.bf16.msra.mxu1 %v2585_v6 }
 0x1d9   :  { %1181 = vmatprep.subr.bf16.mxu1 %v2668_v7 }
 0x1dc   :  { %1182 = vmatpush2.bf16.msra.mxu1 %v2588_v10 }
 0x1dd   :  { %1183 = vmatprep.subr.bf16.mxu1 %v2668_v7 }
 0x1e0   :  { %1184 = vmatpush2.bf16.msra.mxu1 %v2591_v13 }
 0x1e1   :  { %1185 = vmatprep.subr.bf16.mxu1 %v2668_v7  ;;  %v2599_v7 = vld [vmem:[%s3280_s6] sm:$0xff]  }
 0x1e2   :  { %2369 = vmatpush3.bf16.msra.mxu0 %v2599_v7 }
 0x1e4   :  { %1186 = vmatpush2.bf16.msra.mxu1 %v2594_v17 }
 0x277   :  { %v2490_v20 = vpop.f32.mrf.mxu1 }
 0x279   :  { %v685_v24 = vpop.f32.mrf.mxu1 }
 0x27a   :  { %v2332_v23 = vpop.f32.mrf.mxu0 }
 0x27b   :  { %v2491_v30 = vpop.f32.mrf.mxu1 }
 0x27c   :  { %v2333_v26 = vpop.f32.mrf.mxu0 }
 0x27d   :  { %v2334_v27 = vadd.f32 %v2333_v26, %v2332_v23  ;;  %v688_v39 = vpop.f32.mrf.mxu1 }
 0x27e   :  { %v2335_v31 = vpop.f32.mrf.mxu0 }
 0x27f   :  { %v686_v32 = vadd.f32 %v2334_v27, %v685_v24 }
 0x280   :  { %v2336_v35 = vpop.f32.mrf.mxu0 }
 0x281   :  { %v704_v36 = vmul.f32 %v703_v28, %v686_v32  ;;  %v2337_v38 = vadd.f32 %v2336_v35, %v2335_v31 }
 0x282   :  { %v2338_v40 = vpop.f32.mrf.mxu0 }
 0x283   :  { %v712_v44 = vadd.f32 %v711_v33, %v704_v36  ;;  %v689_v47 = vadd.f32 %v2337_v38, %v688_v39 }
 0x284   :  { %v2339_v52 = vpop.f32.mrf.mxu0 }
 0x285   :  { %v716_v0 = vmax.f32 %v712_v44, 0.0  ;;  %v705_v49 = vmul.f32 %v703_v28, %v689_v47  ;;  %v2340_v50 = vadd.f32 %v2339_v52, %v2338_v40  ;;  %v785_v44 = vld [vmem:[#allocation3 + $0x10] sm:$0x3] }
 0x286   :  { %v2341_v51 = vpop.f32.mrf.mxu0 }
 0x287   :  { %v2297_v53 = vpack.c.bf16 %v716_v0, %v716_v0  ;;  %v713_v54 = vadd.f32 %v711_v33, %v705_v49  ;;  %v694_v55 = vadd.f32 %v2490_v20, %v2340_v50 }
 0x288   :  { %v2342_v56 = vpop.f32.mrf.mxu0 }
 0x289   :  { %v728_v58 = vshrl.u32 %v2297_v53, 16  ;;  %v717_v59 = vmax.f32 %v713_v54, 0.0  ;;  %v706_v61 = vmul.f32 %v703_v28, %v694_v55  ;;  %v2343_v62 = vadd.f32 %v2342_v56, %v2341_v51 }
 0x28a   :  { %v731_v1 = vshll.u32 %v2297_v53, 16 }
 0x28b   :  { %v730_v63 = vrot.slane %v728_v58, 7  ;;  %v2298_v2 = vpack.c.bf16 %v717_v59, %v717_v59  ;;  %v714_v3 = vadd.f32 %v711_v33, %v706_v61  ;;  %v697_v5 = vadd.f32 %v2491_v30, %v2343_v62  ;;  %v781_v30 = vld [vmem:[#allocation3 + $0x8] sm:$0xe] }
 0x28d   :  { %v733_v6 = vor.u32 %v731_v1, %v730_v63  ;;  %v736_v8 = vshrl.u32 %v2298_v2, 16  ;;  %v718_v9 = vmax.f32 %v714_v3, 0.0  ;;  %v707_v10 = vmul.f32 %v703_v28, %v697_v5 }
 0x28e   :  { %v739_v13 = vshll.u32 %v2298_v2, 16  ;;  %v734_v18 = vrot.slane %v730_v63, 4 }
 0x28f   :  { %v748_v11 = vsel %vm2868_vm10, %v733_v6, %v747_v4  ;;  %v738_v12 = vrot.slane %v736_v8, 7  ;;  %v2299_v16 = vpack.c.bf16 %v718_v9, %v718_v9  ;;  %v715_v17 = vadd.f32 %v711_v33, %v707_v10 }
 0x290   :  { %749 = vst [vmem:[#allocation3] sm:$0xf] %v748_v11 }
 0x291   :  { %v741_v19 = vor.u32 %v739_v13, %v738_v12  ;;  %v743_v7 = vrot.slane %v738_v12, 4  ;;  %v760_v20 = vshrl.u32 %v2299_v16, 16  ;;  %v763_v21 = vshll.u32 %v2299_v16, 16 }
 0x292   :  { %v719_v23 = vmax.f32 %v715_v17, 0.0 }
 0x293   :  { %v742_v24 = vsel %vm2887_vm1, %v734_v18, %v741_v19  ;;  %v752_v25 = vsel %vm2892_vm3, %v743_v7, %v751_v14  ;;  %v762_v26 = vrot.slane %v760_v20, 6  ;;  %v765_v27 = vrot.slane %v763_v21, 7 }
 0x294   :  { %750 = vst [vmem:[#allocation3 + $0x4] sm:$0xf] %v742_v24  ;;  %753 = vst [vmem:[#allocation3 + $0x8] sm:$0x1] %v752_v25  ;;  %v2300_v28 = vpack.c.bf16 %v719_v23, %v719_v23 }
 0x295   :  { %v766_v31 = vor.u32 %v765_v27, %v762_v26 }
 0x296   :  { %v769_v32 = vshrl.u32 %v2300_v28, 16  ;;  %v772_v33 = vshll.u32 %v2300_v28, 16 }
 0x297   :  { %v782_v35 = vsel %vm2863_vm7, %v766_v31, %v781_v30  ;;  %v767_v39 = vrot.slane %v766_v31, 4  ;;  %v791_v47 = vld [vmem:[#allocation3] sm:$0xe] }
 0x298   :  { %v771_v36 = vrot.slane %v769_v32, 6  ;;  %v774_v38 = vrot.slane %v772_v33, 7  ;;  %783 = vst [vmem:[#allocation3 + $0x8] sm:$0xe] %v782_v35  ;;  %v3021_v0 = vld [vmem:[#allocation3] sm:$0xf] }
 0x299   :  { %v2605_v33 = vld [vmem:[%s3282_s7 + $0x78] sm:$0xff]  }
 0x29a   :  { %v775_v40 = vor.u32 %v774_v38, %v771_v36  ;;  %v2606_v35 = vld [vmem:[%s3282_s7 + $0x38] sm:$0xff]   ;;  %2382 = vmatprep.subr.bf16.mxu0 %v2605_v33  ;;  %v2607_v36 = vld [vmem:[%s3282_s7 + $0x70] sm:$0xff]  }
 0x29b   :  { %v789_v52 = vld [vmem:[#allocation3 + $0x4] sm:$0xf]  ;;  %v2596_v51 = vld [vmem:[#allocation3 + $0x8] ss:$0 sps:$4 sm:$0x11]   ;;  %v2608_v38 = vld [vmem:[%s3282_s7 + $0x30] sm:$0xff]  }
 0x29c   :  { %v776_v49 = vsel %vm2875_vm14, %v767_v39, %v775_v40  ;;  %v777_v50 = vrot.slane %v775_v40, 4  ;;  %v2188_v53 = vcombine.low %v791_v47, %v789_v52  ;;  %v2186_v54 = vcombine.low %v3021_v0, %v789_v52  ;;  %v2609_v39 = vld [vmem:[%s3282_s7 + $0x68] sm:$0xff]   ;;  %v2611_v47 = vld [vmem:[%s3282_s7 + $0x60] sm:$0xff]  }
 0x29d   :  { %784 = vst [vmem:[#allocation3 + $0xc] sm:$0xf] %v776_v49  ;;  %v818_v58 = vrot.slane %v2596_v51, 1  ;;  %v809_v61 = vshll.u32 %v2596_v51, 16  ;;  %v2610_v40 = vld [vmem:[%s3282_s7 + $0x28] sm:$0xff]   ;;  %v2613_v52 = vld [vmem:[%s3282_s7 + $0x20] sm:$0xff]  }
 0x29e   :  { %v786_v55 = vsel %vm2882_vm0, %v777_v50, %v785_v44  ;;  %v817_v56 = vrot.slane %v2188_v53, 1  ;;  %v804_v59 = vshll.u32 %v2186_v54, 16  ;;  %v802_v63 = vshrl.u32 %v2186_v54, 16  ;;  %v2612_v44 = vld [vmem:[%s3282_s7 + $0xb8] sm:$0xff]   ;;  %v2615_v49 = vld [vmem:[%s3282_s7 + $0xb0] sm:$0xff]   ;;  %v2618_v53 = vld [vmem:[%s3282_s7 + $0xa8] sm:$0xff]  }
 0x29f   :  { %787 = vst [vmem:[#allocation3 + $0x10] sm:$0x3] %v786_v55  ;;  %v811_v3 = vrot.slane %v809_v61, 1  ;;  %v825_v5 = vld [vmem:[#allocation3 + $0x8] sm:$0xc]  ;;  %2492 = vmatprep.subr.bf16.mxu1 %v2612_v44  ;;  %v2619_v55 = vld [vmem:[%s3282_s7 + $0x10] sm:$0xff]  }
 0x2a0   :  { %v819_v62 = vsel %vm356_vm4, %v817_v56, %v818_v58  ;;  %v806_v1 = vrot.slane %v804_v59, 1  ;;  %v821_v6 = vld [vmem:[#allocation3 + $0x8] sm:$0xe]  ;;  %v2621_v56 = vld [vmem:[%s3282_s7 + $0xa0] sm:$0xff]   ;;  %v2620_v58 = vld [vmem:[%s3282_s7 + $0x48] sm:$0xff]  }
 0x2a1   :  { %1188 = vmatmul.mubr.bf16.vlgmr.msra.gmra.mxu1 %v819_v62  ;;  %v2614_v50 = vld [vmem:[%s3282_s7 + $0x58] sm:$0xff]   ;;  %v2622_v59 = vld [vmem:[%s3282_s7 + $0x8] sm:$0xff]   ;;  %v2626_v61 = vld [vmem:[%s3282_s7 + $0x40] sm:$0xff]  }
 0x2a2   :  { %2222 = vmatprep.mubr.msk.bf16.mxu1 %vm217_vm2, %v871_v60  ;;  %v807_v2 = vor.u32 %v806_v1, %v802_v63  ;;  %2493 = vmatpush3.bf16.msra.mxu1 %v2612_v44  ;;  %v2616_v51 = vld [vmem:[%s3282_s7 + $0x18] sm:$0xff]   ;;  %v2628_v63 = vld [vmem:[%s3282_s7] sm:$0xff]   ;;  %v2629_v1 = vld [vmem:[%s3282_s7 + $0x90] sm:$0xff]  }
 0x2a3   :  { %2494 = vmatprep.subr.bf16.mxu1 %v2615_v49  ;;  %v2627_v62 = vld [vmem:[%s3282_s7 + $0x98] sm:$0xff]  }
 0x2a4   :  { %v822_v4 = vld [vmem:[#allocation3 + $0xc] sm:$0xf]  ;;  %v812_v8 = vsel %vm339_vm5, %v807_v2, %v811_v3  ;;  %v2630_v2 = vld [vmem:[%s3282_s7 + $0x88] sm:$0xff]  }
 0x2a5   :  { %v2192_v9 = vcombine.low %v825_v5, %v822_v4  ;;  %v2189_v10 = vcombine.low %v821_v6, %v822_v4  ;;  %1138 = vmatprep.mubr.bf16.mxu0 %v812_v8  ;;  %v2631_v3 = vld [vmem:[%s3282_s7 + $0x80] sm:$0xff]   ;;  %v930_v6 = vsub.s32 4, %v2830_v41 }
 0x2a6   :  { %v2601_v11 = vld [vmem:[#allocation3 + $0x10] ss:$0 sps:$4 sm:$0x33]   ;;  %1139 = vmatmul.mubr.bf16.vlgmr.msra.gmra.mxu0 %v2186_v54  ;;  %2495 = vmatpush3.bf16.msra.mxu1 %v2615_v49  ;;  %v2617_v54 = vld [vmem:[%s3282_s7 + $0x50] sm:$0xff]  }
 0x2a7   :  { %v855_v12 = vrot.slane %v2192_v9, 1  ;;  %v840_v13 = vshll.u32 %v2189_v10, 16  ;;  %v856_v14 = vrot.slane %v2601_v11, 1  ;;  %v845_v16 = vshll.u32 %v2601_v11, 16  ;;  %2383 = vmatpush3.bf16.msra.mxu0 %v2606_v35  ;;  %2496 = vmatprep.subr.bf16.mxu1 %v2618_v53 }
 0x2a8   :  { %v838_v17 = vshrl.u32 %v2189_v10, 16  ;;  %v2604_v57 = vld [vmem:[#allocation3 + $0x10] ss:$0 sps:$4 sm:$0x11]   ;;  %v849_v7 = vshrl.u32 %v2601_v11, 16  ;;  %v858_v26 = vrot.slane %v2189_v10, 1  ;;  %2384 = vmatprep.subr.bf16.mxu0 %v2607_v36  ;;  %v931_v11 = vrot.slane %v2836_v43, %v930_v6 }
 0x2a9   :  { %v842_v48 = vrot.slane %v840_v13, 1  ;;  %v857_v60 = vsel %vm356_vm4, %v855_v12, %v856_v14  ;;  %v865_v18 = vrot.slane %v856_v14, 1  ;;  %v847_v19 = vrot.slane %v845_v16, 1 }
 0x2aa   :  { %v864_v20 = vrot.slane %v857_v60, 1  ;;  %v859_v27 = vrot.slane %v2604_v57, 1  ;;  %2497 = vmatpush3.bf16.msra.mxu1 %v2618_v53  ;;  %v1206_v12 = vsub.s32 5, %v2830_v41  ;;  %v1214_v16 = vsub.s32 6, %v2830_v41 }
 0x2ab   :  { %v843_v21 = vor.u32 %v842_v48, %v838_v17  ;;  %v851_v23 = vor.u32 %v849_v7, %v847_v19  ;;  %2385 = vmatpush3.bf16.msra.mxu0 %v2608_v38  ;;  %2498 = vmatprep.subr.bf16.mxu1 %v2621_v56 }
 0x2ac   :  { %v866_v24 = vsel %vm356_vm4, %v864_v20, %v865_v18  ;;  %v860_v32 = vsel %vm356_vm4, %v858_v26, %v859_v27  ;;  %2386 = vmatprep.subr.bf16.mxu0 %v2609_v39  ;;  %v1207_v57 = vrot.slane %v2836_v43, %v1206_v12 }
 0x2ad   :  { %v848_v25 = vsel %vm339_vm5, %v843_v21, %v847_v19  ;;  %1196 = vmatmul.mubr.bf16.gmra.mxu1 %v866_v24  ;;  %v862_v30 = vrot.slane %v851_v23, 1  ;;  %v1215_v19 = vrot.slane %v2836_v43, %v1214_v16 }
 0x2ae   :  { %v861_v28 = vrot.slane %v848_v25, 1  ;;  %2499 = vmatpush3.bf16.msra.mxu1 %v2621_v56 }
 0x2af   :  { %2387 = vmatpush3.bf16.msra.mxu0 %v2610_v40  ;;  %2500 = vmatprep.subr.bf16.mxu1 %v2627_v62 }
 0x2b0   :  { %v863_v31 = vsel %vm356_vm4, %v861_v28, %v862_v30  ;;  %2388 = vmatprep.subr.bf16.mxu0 %v2611_v47 }
 0x2b1   :  { %1146 = vmatprep.mubr.bf16.mxu0 %v863_v31 }
 0x2b2   :  { %1147 = vmatmul.mubr.bf16.gmra.mxu0 %v860_v32  ;;  %2501 = vmatpush3.bf16.msra.mxu1 %v2627_v62 }
 0x2b3   :  { %2389 = vmatpush3.bf16.msra.mxu0 %v2613_v52  ;;  %2502 = vmatprep.subr.bf16.mxu1 %v2629_v1 }
 0x2b4   :  { %2390 = vmatprep.subr.bf16.mxu0 %v2614_v50 }
 0x2b6   :  { %2503 = vmatpush3.bf16.msra.mxu1 %v2629_v1 }
 0x2b7   :  { %2391 = vmatpush3.bf16.msra.mxu0 %v2616_v51  ;;  %2504 = vmatprep.subr.bf16.mxu1 %v2630_v2 }
 0x2b8   :  { %2392 = vmatprep.subr.bf16.mxu0 %v2617_v54 }
 0x2ba   :  { %2505 = vmatpush3.bf16.msra.mxu1 %v2630_v2 }
 0x2bb   :  { %2393 = vmatpush3.bf16.msra.mxu0 %v2619_v55  ;;  %2506 = vmatprep.subr.bf16.mxu1 %v2631_v3 }
 0x2bc   :  { %2394 = vmatprep.subr.bf16.mxu0 %v2620_v58 }
 0x2be   :  { %2507 = vmatpush3.bf16.msra.mxu1 %v2631_v3 }
 0x2bf   :  { %2395 = vmatpush3.bf16.msra.mxu0 %v2622_v59 }
 0x2c0   :  { %2396 = vmatprep.subr.bf16.mxu0 %v2626_v61 }
 0x2c3   :  { %2397 = vmatpush3.bf16.msra.mxu0 %v2628_v63 }
 0x361   :  { %v1189_v4 = vpop.f32.mrf.mxu1 }
 0x363   :  { %v1191_v5 = vpop.f32.mrf.mxu1 }
 0x365   :  { %v1192_v8 = vpop.f32.mrf.mxu1 }
 0x366   :  { %v2370_v9 = vpop.f32.mrf.mxu0 }
 0x367   :  { %v1194_v10 = vpop.f32.mrf.mxu1 }
 0x368   :  { %v2371_v13 = vpop.f32.mrf.mxu0 }
 0x369   :  { %v2372_v14 = vadd.f32 %v2371_v13, %v2370_v9 }
 0x36a   :  { %v2373_v17 = vpop.f32.mrf.mxu0 }
 0x36b   :  { %v1141_v48 = vadd.f32 %v2372_v14, %v931_v11 }
 0x36c   :  { %v2374_v60 = vpop.f32.mrf.mxu0 }
 0x36d   :  { %v3116_v18 = vadd.f32 %v1189_v4, %v1141_v48  ;;  %v2375_v7 = vadd.f32 %v2374_v60, %v2373_v17  ;;  %v1197_v20 = vpop.f32.mrf.mxu1 }
 0x36f   :  { %v1208_v21 = vmul.f32 %v1207_v57, %v3116_v18  ;;  %v1144_v23 = vadd.f32 %v2375_v7, %v931_v11  ;;  %v1199_v24 = vpop.f32.mrf.mxu1 }
 0x371   :  { %v1216_v25 = vadd.f32 %v1215_v19, %v1208_v21  ;;  %v3120_v26 = vadd.f32 %v1192_v8, %v1144_v23  ;;  %v1200_v28 = vpop.f32.mrf.mxu1  ;;  %v1254_v8 = vld [vmem:[#allocation3 + $0x8] sm:$0x1] }
 0x372   :  { %v2376_v27 = vpop.f32.mrf.mxu0 }
 0x373   :  { %v1220_v30 = vmax.f32 %v1216_v25, 0.0  ;;  %v1209_v31 = vmul.f32 %v1207_v57, %v3120_v26  ;;  %v1202_v33 = vpop.f32.mrf.mxu1 }
 0x374   :  { %v2377_v32 = vpop.f32.mrf.mxu0 }
 0x375   :  { %v2378_v35 = vadd.f32 %v2377_v32, %v2376_v27  ;;  %v2301_v36 = vpack.c.bf16 %v1220_v30, %v1220_v30  ;;  %v1217_v38 = vadd.f32 %v1215_v19, %v1209_v31 }
 0x376   :  { %v2379_v43 = vpop.f32.mrf.mxu0 }
 0x377   :  { %v1149_v39 = vadd.f32 %v2378_v35, %v931_v11  ;;  %v1232_v40 = vshrl.u32 %v2301_v36, 16  ;;  %v1221_v44 = vmax.f32 %v1217_v38, 0.0  ;;  %v1235_v51 = vshll.u32 %v2301_v36, 16 }
 0x378   :  { %v2380_v47 = vpop.f32.mrf.mxu0 }
 0x379   :  { %v3123_v52 = vadd.f32 %v1197_v20, %v1149_v39  ;;  %v2381_v49 = vadd.f32 %v2380_v47, %v2379_v43  ;;  %v1234_v50 = vrot.slane %v1232_v40, 7  ;;  %v2302_v53 = vpack.c.bf16 %v1221_v44, %v1221_v44  ;;  %v1284_v20 = vld [vmem:[#allocation3 + $0x8] sm:$0xe]  ;;  %v1288_v39 = vld [vmem:[#allocation3 + $0x10] sm:$0x3] }
 0x37b   :  { %v1210_v54 = vmul.f32 %v1207_v57, %v3123_v52  ;;  %v1152_v55 = vadd.f32 %v2381_v49, %v931_v11  ;;  %v1237_v56 = vor.u32 %v1235_v51, %v1234_v50  ;;  %v1240_v58 = vshrl.u32 %v2302_v53, 16 }
 0x37c   :  { %v1243_v1 = vshll.u32 %v2302_v53, 16  ;;  %v1238_v4 = vrot.slane %v1234_v50, 4 }
 0x37d   :  { %v1218_v59 = vadd.f32 %v1215_v19, %v1210_v54  ;;  %v3126_v61 = vadd.f32 %v1200_v28, %v1152_v55  ;;  %v1251_v62 = vsel %vm2868_vm10, %v1237_v56, %v3021_v0  ;;  %v1242_v63 = vrot.slane %v1240_v58, 7 }
 0x37e   :  { %1252 = vst [vmem:[#allocation3] sm:$0xf] %v1251_v62 }
 0x37f   :  { %v1222_v2 = vmax.f32 %v1218_v59, 0.0  ;;  %v1211_v3 = vmul.f32 %v1207_v57, %v3126_v61  ;;  %v1245_v5 = vor.u32 %v1243_v1, %v1242_v63  ;;  %v1247_v6 = vrot.slane %v1242_v63, 4 }
 0x381   :  { %v2303_v9 = vpack.c.bf16 %v1222_v2, %v1222_v2  ;;  %v1219_v10 = vadd.f32 %v1215_v19, %v1211_v3  ;;  %v1246_v11 = vsel %vm2887_vm1, %v1238_v4, %v1245_v5  ;;  %v1255_v12 = vsel %vm2892_vm3, %v1247_v6, %v1254_v8 }
 0x382   :  { %1253 = vst [vmem:[#allocation3 + $0x4] sm:$0xf] %v1246_v11  ;;  %1256 = vst [vmem:[#allocation3 + $0x8] sm:$0x1] %v1255_v12 }
 0x383   :  { %v1263_v0 = vshrl.u32 %v2303_v9, 16  ;;  %v1266_v13 = vshll.u32 %v2303_v9, 16  ;;  %v1223_v14 = vmax.f32 %v1219_v10, 0.0 }
 0x385   :  { %v1265_v16 = vrot.slane %v1263_v0, 6  ;;  %v1268_v17 = vrot.slane %v1266_v13, 7  ;;  %v2304_v48 = vpack.c.bf16 %v1223_v14, %v1223_v14  ;;  %v3138_v24 = vld [vmem:[#allocation3] sm:$0xf] }
 0x386   :  { %v1294_v27 = vld [vmem:[#allocation3] sm:$0xe] }
 0x387   :  { %v1269_v57 = vor.u32 %v1268_v17, %v1265_v16  ;;  %v1272_v60 = vshrl.u32 %v2304_v48, 16  ;;  %v1275_v7 = vshll.u32 %v2304_v48, 16 }
 0x389   :  { %v1285_v19 = vsel %vm2863_vm7, %v1269_v57, %v1284_v20  ;;  %v1274_v21 = vrot.slane %v1272_v60, 6  ;;  %v1277_v23 = vrot.slane %v1275_v7, 7  ;;  %v1292_v25 = vld [vmem:[#allocation3 + $0x4] sm:$0xf]  ;;  %v1270_v28 = vrot.slane %v1269_v57, 4 }
 0x38a   :  { %1286 = vst [vmem:[#allocation3 + $0x8] sm:$0xe] %v1285_v19  ;;  %v2227_v31 = vcombine.low %v3138_v24, %v1292_v25  ;;  %v2624_v32 = vld [vmem:[#allocation3 + $0x8] ss:$0 sps:$4 sm:$0x11]   ;;  %v2229_v33 = vcombine.low %v1294_v27, %v1292_v25  ;;  %v2638_v27 = vld [vmem:[%s3283_s8 + $0x70] sm:$0xff]  }
 0x38b   :  { %v1278_v30 = vor.u32 %v1277_v23, %v1274_v21  ;;  %v1321_v43 = vrot.slane %v2624_v32, 1  ;;  %v1312_v44 = vshll.u32 %v2624_v32, 16  ;;  %v2636_v23 = vld [vmem:[%s3283_s8 + $0x78] sm:$0xff]   ;;  %v2642_v32 = vld [vmem:[%s3283_s8 + $0x28] sm:$0xff]  }
 0x38c   :  { %v1320_v38 = vrot.slane %v2229_v33, 1  ;;  %v1307_v40 = vshll.u32 %v2227_v31, 16  ;;  %v1305_v50 = vshrl.u32 %v2227_v31, 16  ;;  %v2637_v25 = vld [vmem:[%s3283_s8 + $0x38] sm:$0xff]   ;;  %2420 = vmatprep.subr.bf16.mxu0 %v2636_v23  ;;  %v2643_v33 = vld [vmem:[%s3283_s8 + $0xb0] sm:$0xff]  }
 0x38d   :  { %v1279_v35 = vsel %vm2875_vm14, %v1270_v28, %v1278_v30  ;;  %v1280_v36 = vrot.slane %v1278_v30, 4  ;;  %v1314_v54 = vrot.slane %v1312_v44, 1  ;;  %v2639_v28 = vld [vmem:[%s3283_s8 + $0x30] sm:$0xff]   ;;  %v2640_v30 = vld [vmem:[%s3283_s8 + $0xb8] sm:$0xff]  }
 0x38e   :  { %1287 = vst [vmem:[#allocation3 + $0xc] sm:$0xf] %v1279_v35  ;;  %v1322_v49 = vsel %vm356_vm4, %v1320_v38, %v1321_v43  ;;  %v1309_v51 = vrot.slane %v1307_v40, 1  ;;  %2512 = vmatprep.subr.bf16.mxu1 %v2640_v30  ;;  %v2644_v35 = vld [vmem:[%s3283_s8 + $0x60] sm:$0xff]   ;;  %v2646_v38 = vld [vmem:[%s3283_s8 + $0xa8] sm:$0xff]   ;;  %v2647_v43 = vld [vmem:[%s3283_s8 + $0x58] sm:$0xff]  }
 0x38f   :  { %v1289_v47 = vsel %vm2882_vm0, %v1280_v36, %v1288_v39  ;;  %2508 = vmatprep.mubr.bf16.mxu1 %v1322_v49  ;;  %v2645_v36 = vld [vmem:[%s3283_s8 + $0x20] sm:$0xff]   ;;  %v2648_v39 = vld [vmem:[%s3283_s8 + $0x18] sm:$0xff]   ;;  %v2650_v44 = vld [vmem:[%s3283_s8 + $0x50] sm:$0xff]  }
 0x390   :  { %1290 = vst [vmem:[#allocation3 + $0x10] sm:$0x3] %v1289_v47  ;;  %v1310_v53 = vor.u32 %v1309_v51, %v1305_v50  ;;  %v2649_v40 = vld [vmem:[%s3283_s8 + $0xa0] sm:$0xff]   ;;  %v2651_v47 = vld [vmem:[%s3283_s8 + $0x10] sm:$0xff]   ;;  %v2652_v49 = vld [vmem:[%s3283_s8 + $0x98] sm:$0xff]  }
 0x391   :  { %v1328_v58 = vld [vmem:[#allocation3 + $0x8] sm:$0xc]  ;;  %v2653_v50 = vld [vmem:[%s3283_s8 + $0x48] sm:$0xff]   ;;  %v2655_v51 = vld [vmem:[%s3283_s8 + $0x90] sm:$0xff]  }
 0x392   :  { %v1315_v55 = vsel %vm339_vm5, %v1310_v53, %v1314_v54  ;;  %v1324_v59 = vld [vmem:[#allocation3 + $0x8] sm:$0xe]  ;;  %v2654_v53 = vld [vmem:[%s3283_s8 + $0x8] sm:$0xff]   ;;  %v2659_v54 = vld [vmem:[%s3283_s8 + $0x40] sm:$0xff]  }
 0x393   :  { %1597 = vmatprep.mubr.bf16.mxu0 %v1315_v55  ;;  %v2661_v55 = vld [vmem:[%s3283_s8 + $0x88] sm:$0xff]  }
 0x394   :  { %1598 = vmatmul.mubr.bf16.vlgmr.msra.gmra.mxu0 %v2227_v31  ;;  %v2641_v31 = vld [vmem:[%s3283_s8 + $0x68] sm:$0xff]  }
 0x395   :  { %v1325_v56 = vld [vmem:[#allocation3 + $0xc] sm:$0xf]  ;;  %2421 = vmatpush3.bf16.msra.mxu0 %v2637_v25 }
 0x396   :  { %v2233_v62 = vcombine.low %v1328_v58, %v1325_v56  ;;  %v2230_v63 = vcombine.low %v1324_v59, %v1325_v56  ;;  %2422 = vmatprep.subr.bf16.mxu0 %v2638_v27  ;;  %v2660_v56 = vld [vmem:[%s3283_s8] sm:$0xff]  }
 0x397   :  { %v2632_v1 = vld [vmem:[#allocation3 + $0x10] ss:$0 sps:$4 sm:$0x33]  }
 0x398   :  { %v1358_v2 = vrot.slane %v2233_v62, 1  ;;  %v1343_v3 = vshll.u32 %v2230_v63, 16  ;;  %v1359_v4 = vrot.slane %v2632_v1, 1  ;;  %v1348_v5 = vshll.u32 %v2632_v1, 16  ;;  %v2662_v58 = vld [vmem:[%s3283_s8 + $0x80] sm:$0xff]  }
 0x399   :  { %v1341_v6 = vshrl.u32 %v2230_v63, 16  ;;  %v2635_v9 = vld [vmem:[#allocation3 + $0x10] ss:$0 sps:$4 sm:$0x11]   ;;  %v1352_v0 = vshrl.u32 %v2632_v1, 16  ;;  %v1361_v57 = vrot.slane %v2230_v63, 1  ;;  %2423 = vmatpush3.bf16.msra.mxu0 %v2639_v28 }
 0x39a   :  { %v1345_v8 = vrot.slane %v1343_v3, 1  ;;  %v1360_v10 = vsel %vm356_vm4, %v1358_v2, %v1359_v4  ;;  %v1368_v11 = vrot.slane %v1359_v4, 1  ;;  %v1350_v12 = vrot.slane %v1348_v5, 1  ;;  %2424 = vmatprep.subr.bf16.mxu0 %v2641_v31  ;;  %v3228_v3 = vld [vmem:[%s3281_s4 + $0x8] sm:$0x3]  ;;  %v2667_v5 = vld [vmem:[%s3281_s4] sm:$0xff] }
 0x39b   :  { %v1367_v13 = vrot.slane %v1360_v10, 1  ;;  %v1362_v60 = vrot.slane %v2635_v9, 1  ;;  %v1665_v63 = vsub.s32 7, %v2830_v41 }
 0x39c   :  { %v1346_v14 = vor.u32 %v1345_v8, %v1341_v6  ;;  %v1354_v16 = vor.u32 %v1352_v0, %v1350_v12 }
 0x39d   :  { %v1369_v17 = vsel %vm356_vm4, %v1367_v13, %v1368_v11  ;;  %v1363_v21 = vsel %vm356_vm4, %v1361_v57, %v1362_v60  ;;  %2425 = vmatpush3.bf16.msra.mxu0 %v2642_v32  ;;  %v1666_v6 = vrot.slane %v2667_v5, %v1665_v63  ;;  %v1674_v11 = vrot.slane %v3228_v3, %v224_v42 }
 0x39e   :  { %v1351_v48 = vsel %vm339_vm5, %v1346_v14, %v1350_v12  ;;  %2509 = vmatmul.mubr.bf16.vlgmr.msra.gmra.mxu1 %v1369_v17  ;;  %v1365_v20 = vrot.slane %v1354_v16, 1  ;;  %2426 = vmatprep.subr.bf16.mxu0 %v2644_v35 }
 0x39f   :  { %v1364_v7 = vrot.slane %v1351_v48, 1  ;;  %2513 = vmatpush3.bf16.msra.mxu1 %v2640_v30 }
 0x3a0   :  { %2514 = vmatprep.subr.bf16.mxu1 %v2643_v33 }
 0x3a1   :  { %v1366_v19 = vsel %vm356_vm4, %v1364_v7, %v1365_v20  ;;  %2427 = vmatpush3.bf16.msra.mxu0 %v2645_v36 }
 0x3a2   :  { %1605 = vmatprep.mubr.bf16.mxu0 %v1366_v19  ;;  %2428 = vmatprep.subr.bf16.mxu0 %v2647_v43 }
 0x3a3   :  { %1606 = vmatmul.mubr.bf16.gmra.mxu0 %v1363_v21  ;;  %2515 = vmatpush3.bf16.msra.mxu1 %v2643_v33 }
 0x3a4   :  { %2516 = vmatprep.subr.bf16.mxu1 %v2646_v38 }
 0x3a5   :  { %2429 = vmatpush3.bf16.msra.mxu0 %v2648_v39 }
 0x3a6   :  { %2430 = vmatprep.subr.bf16.mxu0 %v2650_v44 }
 0x3a7   :  { %2517 = vmatpush3.bf16.msra.mxu1 %v2646_v38 }
 0x3a8   :  { %2518 = vmatprep.subr.bf16.mxu1 %v2649_v40 }
 0x3a9   :  { %2431 = vmatpush3.bf16.msra.mxu0 %v2651_v47 }
 0x3aa   :  { %2432 = vmatprep.subr.bf16.mxu0 %v2653_v50 }
 0x3ab   :  { %2519 = vmatpush3.bf16.msra.mxu1 %v2649_v40 }
 0x3ac   :  { %2520 = vmatprep.subr.bf16.mxu1 %v2652_v49 }
 0x3ad   :  { %2433 = vmatpush3.bf16.msra.mxu0 %v2654_v53 }
 0x3ae   :  { %2434 = vmatprep.subr.bf16.mxu0 %v2659_v54 }
 0x3af   :  { %2521 = vmatpush3.bf16.msra.mxu1 %v2652_v49 }
 0x3b0   :  { %2522 = vmatprep.subr.bf16.mxu1 %v2655_v51 }
 0x3b1   :  { %2435 = vmatpush3.bf16.msra.mxu0 %v2660_v56 }
 0x3b3   :  { %2523 = vmatpush3.bf16.msra.mxu1 %v2655_v51 }
 0x3b4   :  { %2524 = vmatprep.subr.bf16.mxu1 %v2661_v55 }
 0x3b7   :  { %2525 = vmatpush3.bf16.msra.mxu1 %v2661_v55 }
 0x3b8   :  { %2526 = vmatprep.subr.bf16.mxu1 %v2662_v58 }
 0x3bb   :  { %2527 = vmatpush3.bf16.msra.mxu1 %v2662_v58 }
 0x454   :  { %v2398_v59 = vpop.f32.mrf.mxu0 }
 0x456   :  { %v2399_v62 = vpop.f32.mrf.mxu0 }
 0x457   :  { %v2400_v4 = vadd.f32 %v2399_v62, %v2398_v59 }
 0x458   :  { %v2401_v1 = vpop.f32.mrf.mxu0 }
 0x45a   :  { %v2402_v8 = vpop.f32.mrf.mxu0 }
 0x45b   :  { %v2403_v13 = vadd.f32 %v2402_v8, %v2401_v1 }
 0x45e   :  { %v2510_v2 = vpop.f32.mrf.mxu1 }
 0x460   :  { %v1648_v9 = vpop.f32.mrf.mxu1 }
 0x461   :  { %v1649_v10 = vadd.f32 %v2400_v4, %v1648_v9 }
 0x462   :  { %v2511_v0 = vpop.f32.mrf.mxu1 }
 0x463   :  { %v2404_v12 = vpop.f32.mrf.mxu0  ;;  %v1667_v14 = vmul.f32 %v1666_v6, %v1649_v10 }
 0x464   :  { %v1651_v17 = vpop.f32.mrf.mxu1 }
 0x465   :  { %v2405_v16 = vpop.f32.mrf.mxu0  ;;  %v1675_v48 = vadd.f32 %v1674_v11, %v1667_v14  ;;  %v1652_v60 = vadd.f32 %v2403_v13, %v1651_v17 }
 0x466   :  { %v2406_v57 = vadd.f32 %v2405_v16, %v2404_v12  ;;  %v1747_v16 = vld [vmem:[#allocation3 + $0x10] sm:$0x3] }
 0x467   :  { %v2407_v7 = vpop.f32.mrf.mxu0  ;;  %v1679_v20 = vmax.f32 %v1675_v48, 0.0  ;;  %v1668_v21 = vmul.f32 %v1666_v6, %v1652_v60 }
 0x468   :  { %v1657_v19 = vadd.f32 %v2510_v2, %v2406_v57  ;;  %v1713_v2 = vld [vmem:[#allocation3 + $0x8] sm:$0x1] }
 0x469   :  { %v2408_v23 = vpop.f32.mrf.mxu0  ;;  %v2305_v25 = vpack.c.bf16 %v1679_v20, %v1679_v20  ;;  %v1676_v28 = vadd.f32 %v1674_v11, %v1668_v21 }
 0x46a   :  { %v1669_v27 = vmul.f32 %v1666_v6, %v1657_v19  ;;  %v2409_v30 = vadd.f32 %v2408_v23, %v2407_v7 }
 0x46b   :  { %v1691_v31 = vshrl.u32 %v2305_v25, 16  ;;  %v1680_v32 = vmax.f32 %v1676_v28, 0.0  ;;  %v1694_v36 = vshll.u32 %v2305_v25, 16 }
 0x46c   :  { %v1677_v42 = vadd.f32 %v1674_v11, %v1669_v27  ;;  %v1660_v33 = vadd.f32 %v2511_v0, %v2409_v30 }
 0x46d   :  { %v1693_v35 = vrot.slane %v1691_v31, 7  ;;  %v2306_v43 = vpack.c.bf16 %v1680_v32, %v1680_v32 }
 0x46e   :  { %v1681_v38 = vmax.f32 %v1677_v42, 0.0  ;;  %v1670_v39 = vmul.f32 %v1666_v6, %v1660_v33 }
 0x46f   :  { %v1696_v40 = vor.u32 %v1694_v36, %v1693_v35  ;;  %v1699_v47 = vshrl.u32 %v2306_v43, 16  ;;  %v1702_v49 = vshll.u32 %v2306_v43, 16  ;;  %v1697_v56 = vrot.slane %v1693_v35, 4 }
 0x470   :  { %v2307_v44 = vpack.c.bf16 %v1681_v38, %v1681_v38  ;;  %v1678_v50 = vadd.f32 %v1674_v11, %v1670_v39 }
 0x471   :  { %v1710_v51 = vsel %vm2868_vm10, %v1696_v40, %v3138_v24  ;;  %v1701_v55 = vrot.slane %v1699_v47, 7  ;;  %v1743_v24 = vld [vmem:[#allocation3 + $0x8] sm:$0xe] }
 0x472   :  { %v1722_v53 = vshrl.u32 %v2307_v44, 16  ;;  %v1725_v54 = vshll.u32 %v2307_v44, 16  ;;  %1711 = vst [vmem:[#allocation3] sm:$0xf] %v1710_v51  ;;  %v1682_v58 = vmax.f32 %v1678_v50, 0.0 }
 0x473   :  { %v1704_v63 = vor.u32 %v1702_v49, %v1701_v55  ;;  %v1706_v1 = vrot.slane %v1701_v55, 4 }
 0x474   :  { %v1724_v59 = vrot.slane %v1722_v53, 6  ;;  %v1727_v62 = vrot.slane %v1725_v54, 7  ;;  %v2308_v4 = vpack.c.bf16 %v1682_v58, %v1682_v58 }
 0x475   :  { %v1705_v6 = vsel %vm2887_vm1, %v1697_v56, %v1704_v63  ;;  %v1714_v22 = vsel %vm2892_vm3, %v1706_v1, %v1713_v2 }
 0x476   :  { %v1728_v5 = vor.u32 %v1727_v62, %v1724_v59  ;;  %1712 = vst [vmem:[#allocation3 + $0x4] sm:$0xf] %v1705_v6  ;;  %1715 = vst [vmem:[#allocation3 + $0x8] sm:$0x1] %v1714_v22  ;;  %v1731_v8 = vshrl.u32 %v2308_v4, 16  ;;  %v1734_v9 = vshll.u32 %v2308_v4, 16 }
 0x478   :  { %v1744_v10 = vsel %vm2863_vm7, %v1728_v5, %v1743_v24  ;;  %v1733_v11 = vrot.slane %v1731_v8, 6  ;;  %v1736_v12 = vrot.slane %v1734_v9, 7  ;;  %v1729_v0 = vrot.slane %v1728_v5, 4 }
 0x479   :  { %1745 = vst [vmem:[#allocation3 + $0x8] sm:$0xe] %v1744_v10  ;;  %v1750_v46 = vld [vmem:[#allocation3] sm:$0xf]  ;;  %v1883_v24 = vrot.slane %v3228_v3, %v232_v45 }
 0x47a   :  { %v1737_v13 = vor.u32 %v1736_v12, %v1733_v11  ;;  %v1753_v48 = vld [vmem:[#allocation3] sm:$0xe] }
 0x47c   :  { %v1738_v37 = vsel %vm2875_vm14, %v1729_v0, %v1737_v13  ;;  %v1739_v14 = vrot.slane %v1737_v13, 4 }
 0x47d   :  { %1746 = vst [vmem:[#allocation3 + $0xc] sm:$0xf] %v1738_v37  ;;  %v1751_v17 = vld [vmem:[#allocation3 + $0x4] sm:$0xf] }
 0x47e   :  { %v1748_v57 = vsel %vm2882_vm0, %v1739_v14, %v1747_v16  ;;  %v2262_v60 = vcombine.low %v1750_v46, %v1751_v17  ;;  %v2657_v15 = vld [vmem:[#allocation3 + $0x8] ss:$0 sps:$4 sm:$0x11]   ;;  %v2264_v7 = vcombine.low %v1753_v48, %v1751_v17 }
 0x47f   :  { %1749 = vst [vmem:[#allocation3 + $0x10] sm:$0x3] %v1748_v57  ;;  %v1780_v19 = vrot.slane %v2657_v15, 1  ;;  %v1771_v23 = vshll.u32 %v2657_v15, 16 }
 0x480   :  { %v1779_v20 = vrot.slane %v2264_v7, 1  ;;  %v1766_v21 = vshll.u32 %v2262_v60, 16  ;;  %v1764_v25 = vshrl.u32 %v2262_v60, 16  ;;  %v1783_v28 = vld [vmem:[#allocation3 + $0x8] sm:$0xe] }
 0x481   :  { %v1773_v31 = vrot.slane %v1771_v23, 1  ;;  %v1787_v32 = vld [vmem:[#allocation3 + $0x8] sm:$0xc] }
 0x482   :  { %v1781_v29 = vsel %vm356_vm4, %v1779_v20, %v1780_v19  ;;  %v1768_v27 = vrot.slane %v1766_v21, 1 }
 0x483   :  { %2528 = vmatprep.mubr.bf16.mxu1 %v1781_v29 }
 0x484   :  { %v1769_v30 = vor.u32 %v1768_v27, %v1764_v25  ;;  %v1784_v42 = vld [vmem:[#allocation3 + $0xc] sm:$0xf] }
 0x485   :  { %v2265_v34 = vcombine.low %v1783_v28, %v1784_v42  ;;  %v2268_v33 = vcombine.low %v1787_v32, %v1784_v42 }
 0x486   :  { %v1774_v35 = vsel %vm339_vm5, %v1769_v30, %v1773_v31  ;;  %v2664_v36 = vld [vmem:[#allocation3 + $0x10] ss:$0 sps:$4 sm:$0x33]  }
 0x487   :  { %2060 = vmatprep.mubr.bf16.mxu0 %v1774_v35  ;;  %v1817_v38 = vrot.slane %v2268_v33, 1  ;;  %v1802_v43 = vshll.u32 %v2265_v34, 16  ;;  %v1818_v39 = vrot.slane %v2664_v36, 1  ;;  %v1807_v40 = vshll.u32 %v2664_v36, 16 }
 0x488   :  { %2061 = vmatmul.mubr.bf16.vlgmr.msra.gmra.mxu0 %v2262_v60  ;;  %v1800_v44 = vshrl.u32 %v2265_v34, 16  ;;  %v2666_v49 = vld [vmem:[#allocation3 + $0x10] ss:$0 sps:$4 sm:$0x11]   ;;  %v1811_v54 = vshrl.u32 %v2664_v36, 16  ;;  %v1820_v63 = vrot.slane %v2265_v34, 1 }
 0x489   :  { %v1804_v47 = vrot.slane %v1802_v43, 1  ;;  %v1819_v50 = vsel %vm356_vm4, %v1817_v38, %v1818_v39  ;;  %v1827_v51 = vrot.slane %v1818_v39, 1  ;;  %v1809_v53 = vrot.slane %v1807_v40, 1 }
 0x48a   :  { %v1826_v55 = vrot.slane %v1819_v50, 1  ;;  %v1821_v1 = vrot.slane %v2666_v49, 1 }
 0x48b   :  { %v1805_v56 = vor.u32 %v1804_v47, %v1800_v44  ;;  %v1813_v58 = vor.u32 %v1811_v54, %v1809_v53 }
 0x48c   :  { %v1828_v59 = vsel %vm356_vm4, %v1826_v55, %v1827_v51  ;;  %v1822_v6 = vsel %vm356_vm4, %v1820_v63, %v1821_v1 }
 0x48d   :  { %v1810_v62 = vsel %vm339_vm5, %v1805_v56, %v1809_v53  ;;  %2529 = vmatmul.mubr.bf16.vlgmr.msra.gmra.mxu1 %v1828_v59  ;;  %v1824_v4 = vrot.slane %v1813_v58, 1 }
 0x48e   :  { %v1823_v2 = vrot.slane %v1810_v62, 1 }
 0x490   :  { %v1825_v5 = vsel %vm356_vm4, %v1823_v2, %v1824_v4 }
 0x491   :  { %2068 = vmatprep.mubr.bf16.mxu0 %v1825_v5 }
 0x492   :  { %2069 = vmatmul.mubr.bf16.gmra.mxu0 %v1822_v6 }
 0x548   :  { %v2436_v22 = vpop.f32.mrf.mxu0 }
 0x54a   :  { %v2437_v8 = vpop.f32.mrf.mxu0 }
 0x54b   :  { %v2438_v9 = vadd.f32 %v2437_v8, %v2436_v22 }
 0x54c   :  { %v2439_v10 = vpop.f32.mrf.mxu0 }
 0x54d   :  { %v2063_v11 = vadd.f32 %v2438_v9, %v1883_v24  ;;  %v2530_v0 = vpop.f32.mrf.mxu1 }
 0x54e   :  { %v2440_v12 = vpop.f32.mrf.mxu0 }
 0x54f   :  { %v2441_v13 = vadd.f32 %v2440_v12, %v2439_v10  ;;  %v2111_v37 = vpop.f32.mrf.mxu1 }
 0x550   :  { %v2112_v14 = vadd.f32 %v2111_v37, %v2063_v11 }
 0x551   :  { %v2066_v16 = vadd.f32 %v2441_v13, %v1883_v24  ;;  %v2531_v17 = vpop.f32.mrf.mxu1 }
 0x552   :  { %v2442_v46 = vpop.f32.mrf.mxu0  ;;  %v2126_v48 = vadd.f32 %v2112_v14, %v3116_v18 }
 0x553   :  { %v2114_v60 = vpop.f32.mrf.mxu1 }
 0x554   :  { %v2443_v57 = vpop.f32.mrf.mxu0  ;;  %2130 = vst [vmem:[%s3284_s9] sm:$0xff] %v2126_v48  ;;  %v2115_v45 = vadd.f32 %v2114_v60, %v2066_v16 }
 0x555   :  { %v2444_v41 = vadd.f32 %v2443_v57, %v2442_v46 }
 0x556   :  { %v2445_v3 = vpop.f32.mrf.mxu0  ;;  %v2127_v7 = vadd.f32 %v2115_v45, %v3120_v26 }
 0x557   :  { %v2071_v15 = vadd.f32 %v2444_v41, %v1883_v24 }
 0x558   :  { %v2446_v20 = vpop.f32.mrf.mxu0  ;;  %2131 = vst [vmem:[%s3284_s9 + $0x8] sm:$0xff] %v2127_v7 }
 0x559   :  { %v2120_v19 = vadd.f32 %v2530_v0, %v2071_v15  ;;  %v2447_v21 = vadd.f32 %v2446_v20, %v2445_v3 }
 0x55b   :  { %v2128_v18 = vadd.f32 %v2120_v19, %v3123_v52  ;;  %v2074_v23 = vadd.f32 %v2447_v21, %v1883_v24 }
 0x55d   :  { %2132 = vst [vmem:[%s3284_s9 + $0x10] sm:$0xff] %v2128_v18  ;;  %v2123_v29 = vadd.f32 %v2531_v17, %v2074_v23 }
 0x55f   :  { %v2129_v25 = vadd.f32 %v2123_v29, %v3126_v61 }
 0x561   :  { %2133 = vst [vmem:[%s3284_s9 + $0x18] sm:$0xff] %v2129_v25 }

</bundles_post_ra>
